<compile_context>
chip_gen: v6e
topology: v6e:2x2x1
jax: 0.10.0
libtpu: 0.0.40
codegen_flags: <defaults>
</compile_context>

<pallas_src>
import jax
import jax.numpy as jnp
import numpy as np
from jax.experimental import pallas as pl
from jax.experimental.pallas import tpu as pltpu


def _leaky_relu(x, slope=0.2):
    return jnp.where(x > 0, x, slope * x)


def gat_fused_kernel(x_ref, mask_ref, w_ref, ablk_ref, abc_ref, out_ref):
    N = x_ref.shape[0]
    D = x_ref.shape[1] - 1          # x_ref carries a trailing ones column
    H = abc_ref.shape[0]
    HD = H * D

    x_aug = x_ref[...]                                   # [N, D+1]  f32
    x0 = x_aug[:, :D]                                    # residual  [N, D]
    madj = mask_ref[...] != 0                            # [N, N]    bool (from int8)

    # --- Linear1 + Linear2 for every head: one MXU matmul, one leaky-relu pass. ---
    z = jnp.dot(x_aug, w_ref[...],
                preferred_element_type=jnp.float32)      # [N, 2*H*D]
    x_full = _leaky_relu(z)                              # left half = x0_i, right = x0_j
    x0_j = x_full[:, HD:]                                # [N, H*D]  (128-aligned slice)

    # --- a_1 / a_2 logits for every head: one block-diagonal matmul. ---
    a_all = jnp.dot(x_full, ablk_ref[...],
                    preferred_element_type=jnp.float32)  # [N, 2*H]
    a1_all = a_all[:, :H]                                # [N, H]
    a2t = a_all[:, H:].T                                 # [H, N]  single small transpose

    # --- Attention for all heads as a lane-concatenated [N, H*N] slab, x0_j stacked
    #     per head along sublanes as [H*N, D]; one matmul then sums over heads. ---
    attn_blocks = []
    xj_blocks = []
    for h in range(H):                                   # static unroll (H is small)
        logits = a1_all[:, h:h + 1] + a2t[h:h + 1, :] + abc_ref[h]   # [N, N]
        s = jax.nn.sigmoid(logits)
        attn_blocks.append(jnp.where(madj, s, 0.0))      # 0/1 mask -> select == multiply
        xj_blocks.append(x0_j[:, h * D:(h + 1) * D])
    attn_all = jnp.concatenate(attn_blocks, axis=1)      # [N, H*N]
    xj_stk = jnp.concatenate(xj_blocks, axis=0)          # [H*N, D]

    agg = jnp.dot(attn_all, xj_stk,
                  preferred_element_type=jnp.float32)    # [N, D] = sum over heads

    # Mean over heads, residual added once.
    out_ref[...] = (agg * (1.0 / H) + x0).astype(out_ref.dtype)


def graph_attention_layer(x0, adj_mask, params):
    """Pallas forward for GraphAttentionLayer (mean over heads)."""
    N, D = x0.shape
    H = params["w1"].shape[0]
    HD = H * D
    f32 = jnp.float32

    # --- Host-side re-layout (done once, outside the kernel). ---
    # Heads stacked on lanes; branch-1 (Linear1) in the left HD lanes, branch-2 right.
    w1cat = jnp.transpose(params["w1"], (1, 0, 2)).reshape(D, HD)     # [D, H*D]
    w2cat = jnp.transpose(params["w2"], (1, 0, 2)).reshape(D, HD)     # [D, H*D]
    b1cat = params["b1"].reshape(1, HD)                               # [1, H*D]
    b2cat = params["b2"].reshape(1, HD)                               # [1, H*D]
    # Fold the biases into the weight via a ones column appended to x0.
    w_aug = jnp.concatenate(
        [jnp.concatenate([w1cat, w2cat], axis=1),
         jnp.concatenate([b1cat, b2cat], axis=1)], axis=0)            # [D+1, 2*H*D]
    x_aug = jnp.concatenate([x0, jnp.ones((N, 1), f32)], axis=1)      # [N, D+1]

    # Block-diagonal a_1 / a_2 weights: one [2*H*D, 2*H] matmul yields every head's
    # attention logits with no per-head lane slices or lane reductions in-kernel.
    a1w = params["a1w"][:, :, 0]                                      # [H, D]
    a2w = params["a2w"][:, :, 0]                                      # [H, D]
    ablk = jnp.zeros((2 * HD, 2 * H), f32)
    for h in range(H):
        ablk = ablk.at[h * D:(h + 1) * D, h].set(a1w[h])
        ablk = ablk.at[HD + h * D:HD + (h + 1) * D, H + h].set(a2w[h])
    # a1b and a2b only ever appear summed inside the sigmoid -> combine per head.
    abc = (params["a1b"][:, 0] + params["a2b"][:, 0]).astype(f32)     # [H]

    mask_i8 = adj_mask.astype(jnp.int8)   # 0/1 adjacency: exact in int8, 4x less HBM

    vmem = pl.BlockSpec(memory_space=pltpu.MemorySpace.VMEM)
    smem = pl.BlockSpec(memory_space=pltpu.MemorySpace.SMEM)

    return pl.pallas_call(
        gat_fused_kernel,
        out_shape=jax.ShapeDtypeStruct((N, D), jnp.float32),
        in_specs=[
            vmem,   # x_aug   [N, D+1]      f32
            vmem,   # mask    [N, N]        int8
            vmem,   # w_aug   [D+1, 2*H*D]  f32
            vmem,   # ablk    [2*H*D, 2*H]  f32
            smem,   # abc     [H]           f32
        ],
        out_specs=vmem,
    )(x_aug, mask_i8, w_aug, ablk, abc)


def reference_forward(x0, mask, params):
    """Pure-JAX reference matching the PyTorch semantics (per-head, f32)."""
    H = params["w1"].shape[0]
    outs = []
    for h in range(H):
        x0_i = _leaky_relu(x0 @ params["w1"][h] + params["b1"][h])
        x0_j = _leaky_relu(x0 @ params["w2"][h] + params["b2"][h])
        a1 = x0_i @ params["a1w"][h] + params["a1b"][h]   # [N, 1]
        a2 = x0_j @ params["a2w"][h] + params["a2b"][h]   # [N, 1]
        attn = jax.nn.sigmoid(a1 + a2.T) * mask
        outs.append(attn @ x0_j + x0)
    return jnp.mean(jnp.stack(outs), axis=0)


if __name__ == "__main__":
    # N nodes, D = input_size = output_size (residual requires equal sizes), H heads.
    # 2*H*D = 256 fills the MXU width; H*N = 256 fills its depth.
    N, D, H = 64, 32, 4

    key = jax.random.PRNGKey(0)
    keys = jax.random.split(key, 12)

    x0 = jax.random.normal(keys[0], (N, D), dtype=jnp.float32)

    # Random sparse-ish adjacency -> dense 0/1 mask (the dense equivalent of the
    # torch.sparse COO adjacency).
    adj_dense = (jax.random.uniform(keys[1], (N, N)) < 0.15).astype(jnp.float32)

    scale = 0.1
    params = {
        "w1":  scale * jax.random.normal(keys[2], (H, D, D), dtype=jnp.float32),
        "b1":  scale * jax.random.normal(keys[3], (H, D), dtype=jnp.float32),
        "w2":  scale * jax.random.normal(keys[4], (H, D, D), dtype=jnp.float32),
        "b2":  scale * jax.random.normal(keys[5], (H, D), dtype=jnp.float32),
        "a1w": scale * jax.random.normal(keys[6], (H, D, 1), dtype=jnp.float32),
        "a1b": scale * jax.random.normal(keys[7], (H, 1), dtype=jnp.float32),
        "a2w": scale * jax.random.normal(keys[8], (H, D, 1), dtype=jnp.float32),
        "a2b": scale * jax.random.normal(keys[9], (H, 1), dtype=jnp.float32),
    }

    out = graph_attention_layer(x0, adj_dense, params)
    out = jax.block_until_ready(out)

    ref = reference_forward(x0, adj_dense, params)
    np.testing.assert_allclose(np.asarray(out), np.asarray(ref),
                               rtol=1e-4, atol=1e-4)

    print("KERNEL_OK")
</pallas_src>

<mosaic_0001>
module attributes {stable_mosaic.version = 11 : i64} {
  func.func @gat_fused_kernel(%arg0: memref<64x33xf32, #tpu.memory_space<vmem>>, %arg1: memref<64x64xi8, #tpu.memory_space<vmem>>, %arg2: memref<33x256xf32, #tpu.memory_space<vmem>>, %arg3: memref<256x8xf32, #tpu.memory_space<vmem>>, %arg4: memref<4xf32, #tpu.memory_space<smem>>, %arg5: memref<64x32xf32, #tpu.memory_space<vmem>>) attributes {dimension_semantics = [], scalar_prefetch = 0 : i64, scratch_operands = 0 : i64, tpu.core_type = #tpu.core_type<tc>} {
    %c0 = arith.constant 0 : index
    %c0_0 = arith.constant 0 : index
    %0 = vector.load %arg0[%c0, %c0_0] : memref<64x33xf32, #tpu.memory_space<vmem>>, vector<64x33xf32>
    %1 = vector.extract_strided_slice %0 {offsets = [0, 0], sizes = [64, 32], strides = [1, 1]} : vector<64x33xf32> to vector<64x32xf32>
    %c0_1 = arith.constant 0 : index
    %c0_2 = arith.constant 0 : index
    %2 = vector.load %arg1[%c0_1, %c0_2] : memref<64x64xi8, #tpu.memory_space<vmem>>, vector<64x64xi8>
    %c0_i8 = arith.constant 0 : i8
    %3 = vector.broadcast %c0_i8 : i8 to vector<64x64xi8>
    %4 = arith.cmpi ne, %2, %3 : vector<64x64xi8>
    %c0_3 = arith.constant 0 : index
    %c0_4 = arith.constant 0 : index
    %5 = vector.load %arg2[%c0_3, %c0_4] : memref<33x256xf32, #tpu.memory_space<vmem>>, vector<33x256xf32>
    %cst = arith.constant dense<0.000000e+00> : vector<64x256xf32>
    %6 = tpu.matmul %0, %5, %cst {dimension_numbers = #tpu.dot_dimension_numbers<[1], [0], [0], [1], [0, 0, 1, 1], [], []>} : vector<64x33xf32>, vector<33x256xf32>, vector<64x256xf32> -> vector<64x256xf32>
    %cst_5 = arith.constant 0.000000e+00 : f32
    %7 = vector.broadcast %cst_5 : f32 to vector<64x256xf32>
    %8 = arith.cmpf ogt, %6, %7 : vector<64x256xf32>
    %cst_6 = arith.constant 2.000000e-01 : f32
    %9 = vector.broadcast %cst_6 : f32 to vector<64x256xf32>
    %10 = arith.mulf %9, %6 : vector<64x256xf32>
    %11 = arith.select %8, %6, %10 : vector<64x256xi1>, vector<64x256xf32>
    %12 = vector.extract_strided_slice %11 {offsets = [0, 128], sizes = [64, 128], strides = [1, 1]} : vector<64x256xf32> to vector<64x128xf32>
    %c0_7 = arith.constant 0 : index
    %c0_8 = arith.constant 0 : index
    %13 = vector.load %arg3[%c0_7, %c0_8] : memref<256x8xf32, #tpu.memory_space<vmem>>, vector<256x8xf32>
    %cst_9 = arith.constant dense<0.000000e+00> : vector<64x8xf32>
    %14 = tpu.matmul %11, %13, %cst_9 {dimension_numbers = #tpu.dot_dimension_numbers<[1], [0], [0], [1], [0, 0, 1, 1], [], []>} : vector<64x256xf32>, vector<256x8xf32>, vector<64x8xf32> -> vector<64x8xf32>
    %15 = vector.extract_strided_slice %14 {offsets = [0, 0], sizes = [64, 4], strides = [1, 1]} : vector<64x8xf32> to vector<64x4xf32>
    %16 = vector.extract_strided_slice %14 {offsets = [0, 4], sizes = [64, 4], strides = [1, 1]} : vector<64x8xf32> to vector<64x4xf32>
    %17 = tpu.transpose %16, [1, 0] : vector<64x4xf32> -> vector<4x64xf32>
    %18 = vector.extract_strided_slice %15 {offsets = [0, 0], sizes = [64, 1], strides = [1, 1]} : vector<64x4xf32> to vector<64x1xf32>
    %19 = vector.extract_strided_slice %17 {offsets = [0, 0], sizes = [1, 64], strides = [1, 1]} : vector<4x64xf32> to vector<1x64xf32>
    %20 = vector.broadcast %18 : vector<64x1xf32> to vector<64x64xf32>
    %21 = vector.broadcast %19 : vector<1x64xf32> to vector<64x64xf32>
    %22 = arith.addf %20, %21 : vector<64x64xf32>
    %c0_10 = arith.constant 0 : index
    %23 = memref.load %arg4[%c0_10] : memref<4xf32, #tpu.memory_space<smem>>
    %24 = vector.broadcast %23 : f32 to vector<64x64xf32>
    %25 = arith.addf %22, %24 : vector<64x64xf32>
    %26 = arith.negf %25 : vector<64x64xf32>
    %27 = math.exp %26 : vector<64x64xf32>
    %cst_11 = arith.constant 1.000000e+00 : f32
    %28 = vector.broadcast %cst_11 : f32 to vector<64x64xf32>
    %29 = arith.addf %28, %27 : vector<64x64xf32>
    %30 = arith.divf %28, %29 : vector<64x64xf32>
    %cst_12 = arith.constant 0.000000e+00 : f32
    %31 = vector.broadcast %cst_12 : f32 to vector<64x64xf32>
    %32 = arith.select %4, %30, %31 : vector<64x64xi1>, vector<64x64xf32>
    %33 = vector.extract_strided_slice %12 {offsets = [0, 0], sizes = [64, 32], strides = [1, 1]} : vector<64x128xf32> to vector<64x32xf32>
    %34 = vector.extract_strided_slice %15 {offsets = [0, 1], sizes = [64, 1], strides = [1, 1]} : vector<64x4xf32> to vector<64x1xf32>
    %35 = vector.extract_strided_slice %17 {offsets = [1, 0], sizes = [1, 64], strides = [1, 1]} : vector<4x64xf32> to vector<1x64xf32>
    %36 = vector.broadcast %34 : vector<64x1xf32> to vector<64x64xf32>
    %37 = vector.broadcast %35 : vector<1x64xf32> to vector<64x64xf32>
    %38 = arith.addf %36, %37 : vector<64x64xf32>
    %c1 = arith.constant 1 : index
    %39 = memref.load %arg4[%c1] : memref<4xf32, #tpu.memory_space<smem>>
    %40 = vector.broadcast %39 : f32 to vector<64x64xf32>
    %41 = arith.addf %38, %40 : vector<64x64xf32>
    %42 = arith.negf %41 : vector<64x64xf32>
    %43 = math.exp %42 : vector<64x64xf32>
    %cst_13 = arith.constant 1.000000e+00 : f32
    %44 = vector.broadcast %cst_13 : f32 to vector<64x64xf32>
    %45 = arith.addf %44, %43 : vector<64x64xf32>
    %46 = arith.divf %44, %45 : vector<64x64xf32>
    %cst_14 = arith.constant 0.000000e+00 : f32
    %47 = vector.broadcast %cst_14 : f32 to vector<64x64xf32>
    %48 = arith.select %4, %46, %47 : vector<64x64xi1>, vector<64x64xf32>
    %49 = vector.extract_strided_slice %12 {offsets = [0, 32], sizes = [64, 32], strides = [1, 1]} : vector<64x128xf32> to vector<64x32xf32>
    %50 = vector.extract_strided_slice %15 {offsets = [0, 2], sizes = [64, 1], strides = [1, 1]} : vector<64x4xf32> to vector<64x1xf32>
    %51 = vector.extract_strided_slice %17 {offsets = [2, 0], sizes = [1, 64], strides = [1, 1]} : vector<4x64xf32> to vector<1x64xf32>
    %52 = vector.broadcast %50 : vector<64x1xf32> to vector<64x64xf32>
    %53 = vector.broadcast %51 : vector<1x64xf32> to vector<64x64xf32>
    %54 = arith.addf %52, %53 : vector<64x64xf32>
    %c2 = arith.constant 2 : index
    %55 = memref.load %arg4[%c2] : memref<4xf32, #tpu.memory_space<smem>>
    %56 = vector.broadcast %55 : f32 to vector<64x64xf32>
    %57 = arith.addf %54, %56 : vector<64x64xf32>
    %58 = arith.negf %57 : vector<64x64xf32>
    %59 = math.exp %58 : vector<64x64xf32>
    %cst_15 = arith.constant 1.000000e+00 : f32
    %60 = vector.broadcast %cst_15 : f32 to vector<64x64xf32>
    %61 = arith.addf %60, %59 : vector<64x64xf32>
    %62 = arith.divf %60, %61 : vector<64x64xf32>
    %cst_16 = arith.constant 0.000000e+00 : f32
    %63 = vector.broadcast %cst_16 : f32 to vector<64x64xf32>
    %64 = arith.select %4, %62, %63 : vector<64x64xi1>, vector<64x64xf32>
    %65 = vector.extract_strided_slice %12 {offsets = [0, 64], sizes = [64, 32], strides = [1, 1]} : vector<64x128xf32> to vector<64x32xf32>
    %66 = vector.extract_strided_slice %15 {offsets = [0, 3], sizes = [64, 1], strides = [1, 1]} : vector<64x4xf32> to vector<64x1xf32>
    %67 = vector.extract_strided_slice %17 {offsets = [3, 0], sizes = [1, 64], strides = [1, 1]} : vector<4x64xf32> to vector<1x64xf32>
    %68 = vector.broadcast %66 : vector<64x1xf32> to vector<64x64xf32>
    %69 = vector.broadcast %67 : vector<1x64xf32> to vector<64x64xf32>
    %70 = arith.addf %68, %69 : vector<64x64xf32>
    %c3 = arith.constant 3 : index
    %71 = memref.load %arg4[%c3] : memref<4xf32, #tpu.memory_space<smem>>
    %72 = vector.broadcast %71 : f32 to vector<64x64xf32>
    %73 = arith.addf %70, %72 : vector<64x64xf32>
    %74 = arith.negf %73 : vector<64x64xf32>
    %75 = math.exp %74 : vector<64x64xf32>
    %cst_17 = arith.constant 1.000000e+00 : f32
    %76 = vector.broadcast %cst_17 : f32 to vector<64x64xf32>
    %77 = arith.addf %76, %75 : vector<64x64xf32>
    %78 = arith.divf %76, %77 : vector<64x64xf32>
    %cst_18 = arith.constant 0.000000e+00 : f32
    %79 = vector.broadcast %cst_18 : f32 to vector<64x64xf32>
    %80 = arith.select %4, %78, %79 : vector<64x64xi1>, vector<64x64xf32>
    %81 = vector.extract_strided_slice %12 {offsets = [0, 96], sizes = [64, 32], strides = [1, 1]} : vector<64x128xf32> to vector<64x32xf32>
    %82 = tpu.concatenate %32, %48, %64, %80 in 1 : vector<64x64xf32>, vector<64x64xf32>, vector<64x64xf32>, vector<64x64xf32> -> vector<64x256xf32>
    %83 = tpu.concatenate %33, %49, %65, %81 in 0 : vector<64x32xf32>, vector<64x32xf32>, vector<64x32xf32>, vector<64x32xf32> -> vector<256x32xf32>
    %cst_19 = arith.constant dense<0.000000e+00> : vector<64x32xf32>
    %84 = tpu.matmul %82, %83, %cst_19 {dimension_numbers = #tpu.dot_dimension_numbers<[1], [0], [0], [1], [0, 0, 1, 1], [], []>} : vector<64x256xf32>, vector<256x32xf32>, vector<64x32xf32> -> vector<64x32xf32>
    %cst_20 = arith.constant 2.500000e-01 : f32
    %85 = vector.broadcast %cst_20 : f32 to vector<64x32xf32>
    %86 = arith.mulf %84, %85 : vector<64x32xf32>
    %87 = arith.addf %86, %1 : vector<64x32xf32>
    %c0_21 = arith.constant 0 : index
    %c0_22 = arith.constant 0 : index
    %88 = vector.load %arg5[%c0_21, %c0_22] : memref<64x32xf32, #tpu.memory_space<vmem>>, vector<64x32xf32>
    tpu.vector_store %arg5[%c0_21, %c0_22], %87 {strides = array<i32>} : memref<64x32xf32, #tpu.memory_space<vmem>>, vector<64x32xf32>,
    return
  }
}

</mosaic_0001>

<bundles_post_ra>
// kernel: tpu_custom_call.1
= control target key start
LH: loop header
LB: loop body
LE: loop exit
PB: predicated region body
PF: predicated region fallthrough
CT: control target
= control target key end

     0   :  { %10 = vsyncpa [#allocation3], 0  ;;  %s2556_s0 = inlined_call_operand.vmem [shape: f32[64,33], index: 0, kind: input, shape index: {}]   ;;  %s2557_s1 = inlined_call_operand.vmem [shape: s8[64,64], index: 1, kind: input, shape index: {}]   ;;  %s2558_s2 = inlined_call_operand.vmem [shape: f32[33,256], index: 2, kind: input, shape index: {}]   ;;  %s2559_s3 = inlined_call_operand.vmem [shape: f32[256,8], index: 3, kind: input, shape index: {}]   ;;  %s2560_s4 = inlined_call_operand.vmem [shape: f32[4], index: 4, kind: input, shape index: {}]   ;;  %s2561_s5 = inlined_call_operand.vmem [shape: f32[64,32], index: 5, kind: output, shape index: {}]  }
   0x1   :  { %s25_s20 = sshll.u32 %s2560_s4, 4  ;;  %s26_s20 = int_to_ptr.vmem [resolvable:$true] %s25_s20 }
   0x2   :  { %s1638_s21 = scalar_lea.vmem %s26_s20, 16  ;;  %p1643_p1 = scmp.lt.s32.totalorder %s26_s20, %s26_s20 }
   0x3   :  { %p1639_p0 = scmp.ne.s32.totalorder %s26_s20, %s1638_s21  ;;  %p1644_p2 = scmp.lt.s32.totalorder %s1638_s21, %s1638_s21 }
   0x5   :  { %p1645_p3 = por %p1644_p2, %p1643_p1 }
   0x7   :  { %p1646_p4 = pnand %p1645_p3, %p1639_p0 }
   0x9   :  { %1649 = shalt.err (!%p1646_p4)
}
   0xa   :  { %s1652_s22 = smov [#allocation2]  }
   0xb   :  { %28 = dma.vmem_to_smem %s26_s20, 16, %s1652_s22, [#allocation3]  }
   0xc   :  { %1650 = dma.done.wait [#allocation3], 16  }
   0xd   :  { %1651 = vsyncadd [#allocation3], 4294967280 }
   0xe   :  { %32 = sfence }
   0xf   :  { %v56_v0 = vld [vmem:[%s2558_s2 + $0x48] sm:$0x1]  ;;  %vm82_vm0 = vcmask 1040384   ;;  %v55_v1 = vld [vmem:[%s2558_s2 + $0x40] sm:$0x1]  ;;  %v54_v2 = vld [vmem:[%s2558_s2 + $0x38] sm:$0xff] }
  0x10   :  { %1245 = vmatprep.subr.msk.mxu0 %vm82_vm0, %v56_v0  ;;  %v53_v3 = vld [vmem:[%s2558_s2 + $0x30] sm:$0xff]  ;;  %v52_v4 = vld [vmem:[%s2558_s2 + $0x28] sm:$0xff]  ;;  %v1653_v5 = vmov 0.0   ;;  %v51_v6 = vld [vmem:[%s2558_s2 + $0x20] sm:$0xff]  ;;  %vm57_vm1 = vcmask 269312   ;;  %s1658_s16 = smov 32  }
  0x11   :  { %1246 = vmatpush1.msk.msra.mxu0 %vm82_vm0, %v55_v1  ;;  %153 = vmatprep.mubr.f32.mxu0 %v1653_v5  ;;  %v50_v7 = vld [vmem:[%s2558_s2 + $0x18] sm:$0xff]  ;;  %v49_v8 = vld [vmem:[%s2558_s2 + $0x10] sm:$0xff]  ;;  %v48_v9 = vld [vmem:[%s2558_s2 + $0x8] sm:$0xff]  ;;  %s1659_s17 = smov 96   ;;  %s1661_s18 = smov 64  }
  0x12   :  { %113 = vmatprep.subr.mxu0 %v54_v2  ;;  %v281_v10 = vld [vmem:[%s2559_s3 + $0xf8] sm:$0xff]  ;;  %v280_v12 = vld [vmem:[%s2559_s3 + $0xf0] sm:$0xff]  ;;  %v47_v13 = vld [vmem:[%s2558_s2] sm:$0xff]  ;;  %s1263_s23 = sld [smem:[#allocation2 + $0x1]] }
  0x13   :  { %114 = vmatpush1.msra.mxu0 %v53_v3  ;;  %v265_v11 = vld [vmem:[%s2559_s3 + $0x78] sm:$0xff]  ;;  %1290 = vmatprep.subr.mxu1 %v281_v10  ;;  %v264_v14 = vld [vmem:[%s2559_s3 + $0x70] sm:$0xff]  ;;  %v35_v15 = vld [vmem:[%s2556_s0] sm:$0xff]  ;;  %s1281_s24 = sld [smem:[#allocation2 + $0x3]] }
  0x14   :  { %115 = vmatprep.subr.mxu0 %v52_v4  ;;  %1291 = vmatpush3.msra.mxu1 %v265_v11  ;;  %v279_v16 = vld [vmem:[%s2559_s3 + $0xe8] sm:$0xff]  ;;  %v278_v18 = vld [vmem:[%s2559_s3 + $0xe0] sm:$0xff]  ;;  %v277_v21 = vld [vmem:[%s2559_s3 + $0xd8] sm:$0xff]  ;;  %s2128_s25 = sld [smem:[#allocation2 + $0x2]] }
  0x15   :  { %116 = vmatpush1.msra.mxu0 %v51_v6  ;;  %1292 = vmatprep.subr.mxu1 %v280_v12  ;;  %v263_v17 = vld [vmem:[%s2559_s3 + $0x68] sm:$0xff]  ;;  %v262_v19 = vld [vmem:[%s2559_s3 + $0x60] sm:$0xff]  ;;  %v261_v22 = vld [vmem:[%s2559_s3 + $0x58] sm:$0xff] }
  0x16   :  { %117 = vmatprep.subr.mxu0 %v50_v7  ;;  %1293 = vmatpush3.msra.mxu1 %v264_v14  ;;  %v36_v20 = vld [vmem:[%s2556_s0 + $0x8] sm:$0xff]  ;;  %v276_v23 = vld [vmem:[%s2559_s3 + $0xd0] sm:$0xff]  ;;  %v274_v28 = vld [vmem:[%s2559_s3 + $0xc0] sm:$0xff] }
  0x17   :  { %118 = vmatpush1.msra.mxu0 %v49_v8  ;;  %1294 = vmatprep.subr.mxu1 %v279_v16  ;;  %v260_v24 = vld [vmem:[%s2559_s3 + $0x50] sm:$0xff]  ;;  %v275_v26 = vld [vmem:[%s2559_s3 + $0xc8] sm:$0xff]  ;;  %v258_v29 = vld [vmem:[%s2559_s3 + $0x40] sm:$0xff] }
  0x18   :  { %119 = vmatprep.subr.mxu0 %v48_v9  ;;  %1295 = vmatpush3.msra.mxu1 %v263_v17  ;;  %v37_v25 = vld [vmem:[%s2556_s0 + $0x10] sm:$0xff]  ;;  %v259_v27 = vld [vmem:[%s2559_s3 + $0x48] sm:$0xff]  ;;  %v38_v30 = vld [vmem:[%s2556_s0 + $0x18] sm:$0xff] }
  0x19   :  { %120 = vmatpush1.msra.mxu0 %v47_v13  ;;  %1296 = vmatprep.subr.mxu1 %v278_v18  ;;  %v273_v31 = vld [vmem:[%s2559_s3 + $0xb8] sm:$0xff]  ;;  %v272_v33 = vld [vmem:[%s2559_s3 + $0xb0] sm:$0xff]  ;;  %v39_v35 = vld [vmem:[%s2556_s0 + $0x20] sm:$0xff] }
  0x1a   :  { %1247 = vmatmul.mubr.msk.f32.vlgmr.msra.gmra.mxu0 %vm57_vm1, %v35_v15  ;;  %1297 = vmatpush3.msra.mxu1 %v262_v19  ;;  %v257_v32 = vld [vmem:[%s2559_s3 + $0x38] sm:$0xff]  ;;  %v256_v34 = vld [vmem:[%s2559_s3 + $0x30] sm:$0xff]  ;;  %v271_v36 = vld [vmem:[%s2559_s3 + $0xa8] sm:$0xff] }
  0x1b   :  { %159 = vmatprep.mubr.f32.mxu0 %v1653_v5  ;;  %1298 = vmatprep.subr.mxu1 %v277_v21  ;;  %v255_v37 = vld [vmem:[%s2559_s3 + $0x28] sm:$0xff]  ;;  %v270_v38 = vld [vmem:[%s2559_s3 + $0xa0] sm:$0xff]  ;;  %v269_v41 = vld [vmem:[%s2559_s3 + $0x98] sm:$0xff] }
  0x1c   :  { %1299 = vmatpush3.msra.mxu1 %v261_v22  ;;  %v254_v39 = vld [vmem:[%s2559_s3 + $0x20] sm:$0xff]  ;;  %v40_v40 = vld [vmem:[%s2556_s0 + $0x28] sm:$0xff]  ;;  %v41_v42 = vld [vmem:[%s2556_s0 + $0x30] sm:$0xff] }
  0x1d   :  { %1300 = vmatprep.subr.mxu1 %v276_v23  ;;  %v42_v43 = vld [vmem:[%s2556_s0 + $0x38] sm:$0xff]  ;;  %v268_v45 = vld [vmem:[%s2559_s3 + $0x90] sm:$0xff]  ;;  %v267_v47 = vld [vmem:[%s2559_s3 + $0x88] sm:$0xff] }
  0x1e   :  { %1248 = vmatmul.mubr.msk.f32.gmra.mxu0 %vm57_vm1, %v36_v20  ;;  %1301 = vmatpush3.msra.mxu1 %v260_v24  ;;  %v253_v44 = vld [vmem:[%s2559_s3 + $0x18] sm:$0xff]  ;;  %v252_v46 = vld [vmem:[%s2559_s3 + $0x10] sm:$0xff]  ;;  %v251_v48 = vld [vmem:[%s2559_s3 + $0x8] sm:$0xff] }
  0x1f   :  { %165 = vmatprep.mubr.f32.mxu0 %v1653_v5  ;;  %1302 = vmatprep.subr.mxu1 %v275_v26  ;;  %v266_v49 = vld [vmem:[%s2559_s3 + $0x80] sm:$0xff] }
  0x20   :  { %1303 = vmatpush3.msra.mxu1 %v259_v27  ;;  %v250_v50 = vld [vmem:[%s2559_s3] sm:$0xff]  ;;  %s1656_s3 = smov 124  }
  0x21   :  { %1304 = vmatprep.subr.mxu1 %v274_v28 }
  0x22   :  { %1249 = vmatmul.mubr.msk.f32.gmra.mxu0 %vm57_vm1, %v37_v25  ;;  %1305 = vmatpush3.msra.mxu1 %v258_v29 }
  0x23   :  { %171 = vmatprep.mubr.f32.mxu0 %v1653_v5  ;;  %1306 = vmatprep.subr.mxu1 %v273_v31 }
  0x24   :  { %1307 = vmatpush3.msra.mxu1 %v257_v32 }
  0x25   :  { %1308 = vmatprep.subr.mxu1 %v272_v33 }
  0x26   :  { %1250 = vmatmul.mubr.msk.f32.gmra.mxu0 %vm57_vm1, %v38_v30  ;;  %1309 = vmatpush3.msra.mxu1 %v256_v34 }
  0x27   :  { %177 = vmatprep.mubr.f32.mxu0 %v1653_v5  ;;  %1310 = vmatprep.subr.mxu1 %v271_v36  ;;  %v1655_v36 = vmov 3  }
  0x28   :  { %1311 = vmatpush3.msra.mxu1 %v255_v37  ;;  %1444 = vset.pattern.permute.xlu0 %v1655_v36 }
  0x29   :  { %1312 = vmatprep.subr.mxu1 %v270_v38 }
  0x2a   :  { %1251 = vmatmul.mubr.msk.f32.gmra.mxu0 %vm57_vm1, %v39_v35  ;;  %1313 = vmatpush3.msra.mxu1 %v254_v39  ;;  %v1654_v35 = vmov 1  }
  0x2b   :  { %183 = vmatprep.mubr.f32.mxu0 %v1653_v5  ;;  %1314 = vmatprep.subr.mxu1 %v269_v41 }
  0x2c   :  { %1315 = vmatpush3.msra.mxu1 %v253_v44  ;;  %1445 = vset.pattern.permute.xlu1 %v1654_v35 }
  0x2d   :  { %1316 = vmatprep.subr.mxu1 %v268_v45 }
  0x2e   :  { %1252 = vmatmul.mubr.msk.f32.gmra.mxu0 %vm57_vm1, %v40_v40  ;;  %1317 = vmatpush3.msra.mxu1 %v252_v46 }
  0x2f   :  { %189 = vmatprep.mubr.f32.mxu0 %v1653_v5  ;;  %1318 = vmatprep.subr.mxu1 %v267_v47 }
  0x30   :  { %1319 = vmatpush3.msra.mxu1 %v251_v48 }
  0x31   :  { %1320 = vmatprep.subr.mxu1 %v266_v49 }
  0x32   :  { %1253 = vmatmul.mubr.msk.f32.gmra.mxu0 %vm57_vm1, %v41_v42  ;;  %1321 = vmatpush3.msra.mxu1 %v250_v50 }
  0x33   :  { %195 = vmatprep.mubr.f32.mxu0 %v1653_v5 }
  0x36   :  { %1254 = vmatmul.mubr.msk.f32.gmra.mxu0 %vm57_vm1, %v42_v43 }
  0xda   :  { %v155_v51 = vpop.f32.mrf.mxu0 }
  0xdb   :  { %v218_v52 = vmul.f32 0.2, %v155_v51  ;;  %vm202_vm2 = vcmp.gt.f32.partialorder %v155_v51, 0.0 }
  0xdc   :  { %v157_v53 = vpop.f32.mrf.mxu0 }
  0xdd   :  { %vm203_vm3 = vcmp.gt.f32.partialorder %v157_v53, 0.0  ;;  %v219_v54 = vmul.f32 0.2, %v157_v53  ;;  %v234_v59 = vsel %vm202_vm2, %v155_v51, %v218_v52 }
  0xde   :  { %v161_v55 = vpop.f32.mrf.mxu0 }
  0xdf   :  { %v1861_v56 = vsel %vm203_vm3, %v157_v53, %v219_v54  ;;  %v220_v57 = vmul.f32 0.2, %v161_v55  ;;  %vm204_vm4 = vcmp.gt.f32.partialorder %v161_v55, 0.0 }
  0xe0   :  { %v163_v58 = vpop.f32.mrf.mxu0  ;;  %346 = vmatprep.mubr.f32.mxu1 %v1861_v56 }
  0xe1   :  { %vm205_vm5 = vcmp.gt.f32.partialorder %v163_v58, 0.0  ;;  %v221_v60 = vmul.f32 0.2, %v163_v58  ;;  %347 = vmatmul.mubr.f32.vlgmr.msra.gmra.mxu1 %v234_v59  ;;  %v236_v1 = vsel %vm204_vm4, %v161_v55, %v220_v57 }
  0xe2   :  { %v167_v61 = vpop.f32.mrf.mxu0 }
  0xe3   :  { %v1864_v62 = vsel %vm205_vm5, %v163_v58, %v221_v60  ;;  %v222_v63 = vmul.f32 0.2, %v167_v61  ;;  %vm206_vm6 = vcmp.gt.f32.partialorder %v167_v61, 0.0  ;;  %v1657_v58 = vmov 2  }
  0xe4   :  { %v169_v0 = vpop.f32.mrf.mxu0  ;;  %351 = vmatprep.mubr.f32.mxu1 %v1864_v62 }
  0xe5   :  { %vm207_vm7 = vcmp.gt.f32.partialorder %v169_v0, 0.0  ;;  %v223_v2 = vmul.f32 0.2, %v169_v0  ;;  %352 = vmatmul.mubr.f32.gmra.mxu1 %v236_v1  ;;  %v238_v7 = vsel %vm206_vm6, %v167_v61, %v222_v63 }
  0xe6   :  { %v173_v3 = vpop.f32.mrf.mxu0 }
  0xe7   :  { %v1867_v4 = vsel %vm207_vm7, %v169_v0, %v223_v2  ;;  %vm208_vm8 = vcmp.gt.f32.partialorder %v173_v3, 0.0  ;;  %v224_v5 = vmul.f32 0.2, %v173_v3  ;;  %v1660_v0 = vmov 0  }
  0xe8   :  { %v175_v6 = vpop.f32.mrf.mxu0  ;;  %356 = vmatprep.mubr.f32.mxu1 %v1867_v4 }
  0xe9   :  { %vm209_vm9 = vcmp.gt.f32.partialorder %v175_v6, 0.0  ;;  %v225_v8 = vmul.f32 0.2, %v175_v6  ;;  %357 = vmatmul.mubr.f32.gmra.mxu1 %v238_v7  ;;  %v240_v10 = vsel %vm208_vm8, %v173_v3, %v224_v5 }
  0xea   :  { %v179_v9 = vpop.f32.mrf.mxu0 }
  0xeb   :  { %v1870_v11 = vsel %vm209_vm9, %v175_v6, %v225_v8  ;;  %vm210_vm10 = vcmp.gt.f32.partialorder %v179_v9, 0.0  ;;  %v226_v12 = vmul.f32 0.2, %v179_v9 }
  0xec   :  { %v181_v13 = vpop.f32.mrf.mxu0  ;;  %361 = vmatprep.mubr.f32.mxu1 %v1870_v11 }
  0xed   :  { %vm211_vm11 = vcmp.gt.f32.partialorder %v181_v13, 0.0  ;;  %v227_v14 = vmul.f32 0.2, %v181_v13  ;;  %362 = vmatmul.mubr.f32.gmra.mxu1 %v240_v10  ;;  %v242_v16 = vsel %vm210_vm10, %v179_v9, %v226_v12 }
  0xee   :  { %v185_v15 = vpop.f32.mrf.mxu0 }
  0xef   :  { %v1873_v17 = vsel %vm211_vm11, %v181_v13, %v227_v14  ;;  %vm212_vm12 = vcmp.gt.f32.partialorder %v185_v15, 0.0  ;;  %v228_v18 = vmul.f32 0.2, %v185_v15 }
  0xf0   :  { %v187_v19 = vpop.f32.mrf.mxu0  ;;  %366 = vmatprep.mubr.f32.mxu1 %v1873_v17 }
  0xf1   :  { %vm213_vm13 = vcmp.gt.f32.partialorder %v187_v19, 0.0  ;;  %v229_v20 = vmul.f32 0.2, %v187_v19  ;;  %367 = vmatmul.mubr.f32.gmra.mxu1 %v242_v16  ;;  %v244_v22 = vsel %vm212_vm12, %v185_v15, %v228_v18 }
  0xf2   :  { %v191_v21 = vpop.f32.mrf.mxu0 }
  0xf3   :  { %v1876_v23 = vsel %vm213_vm13, %v187_v19, %v229_v20  ;;  %vm214_vm14 = vcmp.gt.f32.partialorder %v191_v21, 0.0  ;;  %v230_v24 = vmul.f32 0.2, %v191_v21 }
  0xf4   :  { %v193_v25 = vpop.f32.mrf.mxu0  ;;  %371 = vmatprep.mubr.f32.mxu1 %v1876_v23 }
  0xf5   :  { %vm215_vm15 = vcmp.gt.f32.partialorder %v193_v25, 0.0  ;;  %v231_v26 = vmul.f32 0.2, %v193_v25  ;;  %372 = vmatmul.mubr.f32.gmra.mxu1 %v244_v22  ;;  %v246_v27 = vsel %vm214_vm14, %v191_v21, %v230_v24 }
  0xf6   :  { %v197_v28 = vpop.f32.mrf.mxu0 }
  0xf7   :  { %v1879_v29 = vsel %vm215_vm15, %v193_v25, %v231_v26  ;;  %vm216_vm0 = vcmp.gt.f32.partialorder %v197_v28, 0.0  ;;  %v232_v30 = vmul.f32 0.2, %v197_v28 }
  0xf8   :  { %376 = vmatprep.mubr.f32.mxu1 %v1879_v29  ;;  %v199_v31 = vpop.f32.mrf.mxu0 }
  0xf9   :  { %377 = vmatmul.mubr.f32.gmra.mxu1 %v246_v27  ;;  %vm217_vm1 = vcmp.gt.f32.partialorder %v199_v31, 0.0  ;;  %v233_v32 = vmul.f32 0.2, %v199_v31  ;;  %v248_v33 = vsel %vm216_vm0, %v197_v28, %v232_v30 }
  0xfb   :  { %v1882_v34 = vsel %vm217_vm1, %v199_v31, %v233_v32 }
  0xfc   :  { %381 = vmatprep.mubr.f32.mxu1 %v1882_v34 }
  0xfd   :  { %382 = vmatmul.mubr.f32.gmra.mxu1 %v248_v33 }
 0x1a1   :  { %v1322_v37 = vpop.f32.mrf.mxu1 }
 0x1a3   :  { %v1323_v38 = vpop.f32.mrf.mxu1 }
 0x1a4   :  { %v1887_v39 = vadd.f32 %v1323_v38, %v1322_v37 }
 0x1a5   :  { %v1325_v40 = vpop.f32.mrf.mxu1 }
 0x1a6   :  { %620 = vperm.xlu1 %1445, %v1887_v39   ;;  %395 = vrot.lane.b32.xlu0 %v1887_v39, %s1656_s3 }
 0x1a7   :  { %v1326_v41 = vpop.f32.mrf.mxu1 }
 0x1a8   :  { %v1892_v42 = vadd.f32 %v1326_v41, %v1325_v40 }
 0x1a9   :  { %v1328_v43 = vpop.f32.mrf.mxu1 }
 0x1aa   :  { %1446 = vset.pattern.permute.xlu1 %v1655_v36  ;;  %840 = vperm.xlu0 %1444, %v1887_v39  }
 0x1ab   :  { %844 = vperm.xlu1 %1446, %v1892_v42   ;;  %v1329_v44 = vpop.f32.mrf.mxu1 }
 0x1ac   :  { %v1897_v45 = vadd.f32 %v1329_v44, %v1328_v43 }
 0x1ad   :  { %v1331_v46 = vpop.f32.mrf.mxu1 }
 0x1ae   :  { %397 = vrot.lane.b32.xlu0 %v1892_v42, %s1656_s3 }
 0x1af   :  { %399 = vrot.lane.b32.xlu1 %v1897_v45, %s1656_s3  ;;  %v1332_v47 = vpop.f32.mrf.mxu1  ;;  %1447 = vset.pattern.permute.xlu0 %v1654_v35 }
 0x1b0   :  { %v1333_v54 = vadd.f32 %v1332_v47, %v1331_v46 }
 0x1b1   :  { %v1334_v48 = vpop.f32.mrf.mxu1 }
 0x1b2   :  { %624 = vperm.xlu0 %1447, %v1892_v42  }
 0x1b3   :  { %848 = vperm.xlu1 %1446, %v1897_v45   ;;  %v1335_v49 = vpop.f32.mrf.mxu1 }
 0x1b4   :  { %v1906_v50 = vadd.f32 %v1335_v49, %v1334_v48  ;;  %v44_v48 = vld [vmem:[%s2557_s1 + $0x8] sm:$0xff] }
 0x1b5   :  { %v1337_v51 = vpop.f32.mrf.mxu1  ;;  %vm46_vm3 = vnez %v44_v48 }
 0x1b6   :  { %403 = vrot.lane.b32.xlu0 %v1906_v50, %s1656_s3 }
 0x1b7   :  { %1448 = vset.pattern.permute.xlu1 %v1654_v35  ;;  %v1338_v52 = vpop.f32.mrf.mxu1 }
 0x1b8   :  { %628 = vperm.xlu1 %1448, %v1897_v45   ;;  %v1923_v59 = vadd.f32 %v1338_v52, %v1337_v51  ;;  %v2052_v51 = vsel %vm46_vm3, 16843009, %v1660_v0 }
 0x1b9   :  { %v1340_v53 = vpop.f32.mrf.mxu1 }
 0x1ba   :  { %636 = vperm.xlu0 %1447, %v1906_v50  }
 0x1bb   :  { %v1341_v55 = vpop.f32.mrf.mxu1 }
 0x1bc   :  { %v1913_v57 = vadd.f32 %v1341_v55, %v1340_v53  ;;  %401 = vrot.lane.b32.xlu1 %v1333_v54, %s1656_s3 }
 0x1bd   :  { %v1343_v60 = vpop.f32.mrf.mxu1 }
 0x1be   :  { %407 = vrot.lane.b32.xlu0 %v1913_v57, %s1656_s3 }
 0x1bf   :  { %1451 = vset.pattern.permute.xlu0 %v1657_v58  ;;  %v1344_v61 = vpop.f32.mrf.mxu1 }
 0x1c0   :  { %632 = vperm.xlu1 %1448, %v1333_v54   ;;  %v1345_v63 = vadd.f32 %v1344_v61, %v1343_v60  ;;  %v561_v60 = vunpack.c.2.s8 %v2052_v51 }
 0x1c2   :  { %730 = vperm.xlu0 %1451, %v1887_v39  }
 0x1c4   :  { %1449 = vset.pattern.permute.xlu1 %v1655_v36 }
 0x1c5   :  { %856 = vperm.xlu1 %1449, %v1906_v50  }
 0x1c6   :  { %734 = vperm.xlu0 %1451, %v1892_v42  }
 0x1c9   :  { %405 = vrot.lane.b32.xlu1 %v1923_v59, %s1656_s3 }
 0x1ca   :  { %738 = vperm.xlu0 %1451, %v1897_v45  }
 0x1cd   :  { %860 = vperm.xlu1 %1449, %v1923_v59  }
 0x1ce   :  { %742 = vperm.xlu0 %1451, %v1333_v54  }
 0x1d1   :  { %1450 = vset.pattern.permute.xlu1 %v1654_v35 }
 0x1d2   :  { %640 = vperm.xlu1 %1450, %v1923_v59   ;;  %1100 = vrot.lane.b32.xlu0 %v1882_v34, %s1658_s16 }
 0x1d6   :  { %1052 = vrot.lane.b32.xlu1 %v1882_v34, %s1659_s17  ;;  %1098 = vrot.lane.b32.xlu0 %v1879_v29, %s1658_s16 }
 0x1da   :  { %1048 = vrot.lane.b32.xlu1 %v1876_v23, %s1659_s17  ;;  %1050 = vrot.lane.b32.xlu0 %v1879_v29, %s1659_s17 }
 0x1de   :  { %1094 = vrot.lane.b32.xlu1 %v1873_v17, %s1658_s16  ;;  %746 = vperm.xlu0 %1451, %v1906_v50  }
 0x1e2   :  { %644 = vperm.xlu1 %1450, %v1913_v57   ;;  %1452 = vset.pattern.permute.xlu0 %v1655_v36 }
 0x1e3   :  { %852 = vperm.xlu0 %1452, %v1333_v54  }
 0x1e6   :  { %409 = vrot.lane.b32.xlu1 %v1345_v63, %s1656_s3 }
 0x1e7   :  { %1096 = vrot.lane.b32.xlu0 %v1876_v23, %s1658_s16  ;;  %1453 = vset.pattern.permute.xlu1 %v1655_v36 }
 0x1ea   :  { %868 = vperm.xlu1 %1453, %v1345_v63  }
 0x1eb   :  { %864 = vperm.xlu0 %1452, %v1913_v57  }
 0x1ee   :  { %1455 = vset.pattern.permute.xlu1 %v1657_v58 }
 0x1ef   :  { %1454 = vset.pattern.permute.xlu0 %v1654_v35  ;;  %750 = vperm.xlu1 %1455, %v1923_v59  }
 0x1f0   :  { %648 = vperm.xlu0 %1454, %v1345_v63  }
 0x1f4   :  { %1046 = vrot.lane.b32.xlu0 %v1873_v17, %s1659_s17 }
 0x1f5   :  { %1458 = vset.pattern.permute.xlu0 %v1657_v58 }
 0x1f8   :  { %1092 = vrot.lane.b32.xlu0 %v1870_v11, %s1658_s16 }
 0x1fc   :  { %1044 = vrot.lane.b32.xlu0 %v1870_v11, %s1659_s17 }
 0x200   :  { %1042 = vrot.lane.b32.xlu0 %v1867_v4, %s1659_s17 }
 0x204   :  { %758 = vperm.xlu0 %1458, %v1345_v63  }
 0x208   :  { %1459 = vset.pattern.permute.xlu0 %v1660_v0 }
 0x209   :  { %452 = vperm.xlu0 %1459, %v1887_v39  }
 0x20d   :  { %456 = vperm.xlu0 %1459, %v1892_v42  }
 0x211   :  { %460 = vperm.xlu0 %1459, %v1897_v45   ;;  %v43_v45 = vld [vmem:[%s2557_s1] sm:$0xff]  ;;  %s2120_s1 = sld [smem:[#allocation2]] }
 0x212   :  { %vm45_vm2 = vnez %v43_v45 }
 0x213   :  { %v2045_v46 = vsel %vm45_vm2, 16843009, %v1660_v0 }
 0x214   :  { %v557_v47 = vunpack.c.2.s8 %v2045_v46 }
 0x215   :  { %464 = vperm.xlu0 %1459, %v1333_v54  }
 0x216   :  { %v567_v49 = vpack.c.b16 %v557_v47, %v557_v47 }
 0x218   :  { %v396_v1 = vpop.permute.xlu0 %395  ;;  %v568_v53 = vpack.c.b8 %v567_v49, %v567_v49 }
 0x219   :  { %468 = vperm.xlu0 %1459, %v1906_v50   ;;  %419 = vxpose.xlu1.b32.start [1/8] (short) (narrow) %v396_v1, 8  ;;  %v483_v50 = vlaneseq }
 0x21a   :  { %vm581_vm4 = vnez %v568_v53  ;;  %v558_v53 = vunpack.c.3.s8 %v2045_v46 }
 0x21b   :  { %v484_v55 = vshrl.u32 %v483_v50, 7 }
 0x21d   :  { %480 = vperm.xlu0 %1459, %v1345_v63   ;;  %v485_v63 = vsub.s32 0, %v484_v55 }
 0x221   :  { %v1968_v2 = vpop.permute.xlu1 %620  ;;  %1038 = vrot.lane.b32.xlu0 %v1861_v56, %s1659_s17 }
 0x222   :  { %1501 = vset.pattern.permute.xlu0 %v1655_v36 }
 0x225   :  { %v1973_v3 = vpop.permute.xlu0 %840  ;;  %1074 = vrot.lane.b32.xlu0 %v1879_v29, %s1661_s18 }
 0x226   :  { %v1977_v5 = vpop.permute.xlu1 %844 }
 0x229   :  { %v398_v6 = vpop.permute.xlu0 %397  ;;  %1070 = vrot.lane.b32.xlu0 %v1873_v17, %s1661_s18 }
 0x22a   :  { %v400_v7 = vpop.permute.xlu1 %399  ;;  %420 = vxpose.xlu1.b32.cont [2/8] (short) (narrow) %v398_v6, 8 }
 0x22d   :  { %v1981_v8 = vpop.permute.xlu0 %624  ;;  %1066 = vrot.lane.b32.xlu0 %v1867_v4, %s1661_s18 }
 0x22e   :  { %v1985_v9 = vpop.permute.xlu1 %848  ;;  %421 = vxpose.xlu1.b32.cont [3/8] (short) (narrow) %v400_v7, 8  ;;  %v653_v7 = vsub.s32 1, %v484_v55 }
 0x231   :  { %v404_v10 = vpop.permute.xlu0 %403 }
 0x233   :  { %v1987_v12 = vpop.permute.xlu1 %628 }
 0x235   :  { %v1989_v13 = vpop.permute.xlu0 %636 }
 0x237   :  { %v402_v14 = vpop.permute.xlu1 %401 }
 0x238   :  { %422 = vxpose.xlu1.b32.cont [4/8] (short) (narrow) %v402_v14, 8  ;;  %v873_v14 = vsub.s32 3, %v484_v55 }
 0x239   :  { %v408_v15 = vpop.permute.xlu0 %407 }
 0x23b   :  { %v1991_v16 = vpop.permute.xlu1 %632 }
 0x23c   :  { %423 = vxpose.xlu1.b32.cont [5/8] (short) (narrow) %v404_v10, 8  ;;  %v763_v10 = vsub.s32 2, %v484_v55 }
 0x23d   :  { %v1993_v18 = vpop.permute.xlu0 %730 }
 0x240   :  { %v1995_v19 = vpop.permute.xlu1 %856 }
 0x241   :  { %v1997_v20 = vpop.permute.xlu0 %734 }
 0x244   :  { %v406_v21 = vpop.permute.xlu1 %405 }
 0x245   :  { %v1999_v22 = vpop.permute.xlu0 %738  ;;  %424 = vxpose.xlu1.b32.cont [6/8] (short) (narrow) %v406_v21, 8 }
 0x248   :  { %v2001_v24 = vpop.permute.xlu1 %860 }
 0x249   :  { %v2003_v25 = vpop.permute.xlu0 %742  ;;  %425 = vxpose.xlu1.b32.cont [7/8] (short) (narrow) %v408_v15, 8  ;;  %v2063_v15 = vsel %vm581_vm4, 16843009, %v1660_v0  ;;  %vm1013_vm4 = vcmask 523264  }
 0x24d   :  { %v2005_v26 = vpop.permute.xlu1 %640  ;;  %v1101_v27 = vpop.permute.xlu0 %1100 }
 0x24e   :  { %1346 = vmatprep.subr.mxu0 %v1101_v27  ;;  %1402 = vmatprep.subr.mxu1 %v1101_v27 }
 0x251   :  { %v1053_v28 = vpop.permute.xlu1 %1052  ;;  %v1099_v30 = vpop.permute.xlu0 %1098 }
 0x252   :  { %1347 = vmatpush3.msra.mxu0 %v1053_v28  ;;  %1418 = vmatpush3.msra.mxu1 %v1053_v28  ;;  %v562_v28 = vunpack.c.3.s8 %v2052_v51 }
 0x253   :  { %1348 = vmatprep.subr.mxu0 %v1099_v30  ;;  %1403 = vmatprep.subr.mxu1 %v1099_v30  ;;  %v2068_v30 = vpack.c.b16 %v561_v60, %v561_v60 }
 0x254   :  { %v2081_v50 = vpack.c.b16 %v562_v28, %v562_v28 }
 0x255   :  { %v1049_v31 = vpop.permute.xlu1 %1048  ;;  %v1051_v32 = vpop.permute.xlu0 %1050  ;;  %v576_v49 = vpack.c.b8 %v2068_v30, %v2068_v30  ;;  %v2167_v30 = vstv %s2128_s25 }
 0x256   :  { %1349 = vmatpush3.msra.mxu0 %v1051_v32  ;;  %1419 = vmatpush3.msra.mxu1 %v1051_v32 }
 0x257   :  { %vm585_vm8 = vnez %v576_v49 }
 0x259   :  { %v1095_v33 = vpop.permute.xlu1 %1094  ;;  %v2007_v35 = vpop.permute.xlu0 %746 }
 0x25d   :  { %v2009_v36 = vpop.permute.xlu1 %644 }
 0x25e   :  { %v2011_v37 = vpop.permute.xlu0 %852 }
 0x261   :  { %v410_v38 = vpop.permute.xlu1 %409 }
 0x262   :  { %v1097_v39 = vpop.permute.xlu0 %1096  ;;  %426 = vxpose.xlu1.b32.end [8/8] (short) (narrow) %v410_v38, 8  ;;  %v2073_v38 = vstv %s1281_s24 }
 0x263   :  { %1350 = vmatprep.subr.mxu0 %v1097_v39  ;;  %1404 = vmatprep.subr.mxu1 %v1097_v39 }
 0x264   :  { %1351 = vmatpush3.msra.mxu0 %v1049_v31  ;;  %1420 = vmatpush3.msra.mxu1 %v1049_v31  ;;  %v2070_v31 = vstv %s1263_s23 }
 0x265   :  { %1352 = vmatprep.subr.mxu0 %v1095_v33  ;;  %1405 = vmatprep.subr.mxu1 %v1095_v33  ;;  %v869_v52 = vpop.permute.xlu1 %868  ;;  %v597_v33 = vunpack.c.0.s8 %v2063_v15 }
 0x266   :  { %v2013_v40 = vpop.permute.xlu0 %864 }
 0x267   :  { %vm2204_vm12 = vcmp.ne.s32.totalorder %v597_v33, 0 }
 0x26a   :  { %v2060_v61 = vpop.permute.xlu1 %750 }
 0x26b   :  { %v2015_v41 = vpop.permute.xlu0 %648 }
 0x26f   :  { %v1047_v42 = vpop.permute.xlu0 %1046 }
 0x270   :  { %1353 = vmatpush3.msra.mxu0 %v1047_v42  ;;  %1421 = vmatpush3.msra.mxu1 %v1047_v42 }
 0x273   :  { %v1093_v43 = vpop.permute.xlu0 %1092 }
 0x274   :  { %1354 = vmatprep.subr.mxu0 %v1093_v43  ;;  %1406 = vmatprep.subr.mxu1 %v1093_v43 }
 0x277   :  { %v1045_v44 = vpop.permute.xlu0 %1044 }
 0x278   :  { %1355 = vmatpush3.msra.mxu0 %v1045_v44  ;;  %1422 = vmatpush3.msra.mxu1 %v1045_v44 }
 0x27b   :  { %v2054_v54 = vpop.permute.xlu0 %1042 }
 0x27f   :  { %v2065_v21 = vpop.permute.xlu0 %758 }
 0x280   :  { %1456 = vset.pattern.permute.xlu1 %v1660_v0 }
 0x281   :  { %472 = vperm.xlu1 %1456, %v1923_v59   ;;  %v556_v59 = vunpack.c.1.s8 %v2045_v46 }
 0x283   :  { %v565_v27 = vpack.c.b16 %v556_v59, %v556_v59 }
 0x284   :  { %v453_v60 = vpop.permute.xlu0 %452 }
 0x285   :  { %1090 = vrot.lane.b32.xlu1 %v1867_v4, %s1658_s16  ;;  %v566_v48 = vpack.c.b8 %v565_v27, %v565_v27 }
 0x286   :  { %1457 = vset.pattern.permute.xlu1 %v1657_v58  ;;  %v559_v58 = vunpack.c.0.s8 %v2052_v51 }
 0x287   :  { %vm2112_vm7 = vnez %v566_v48 }
 0x288   :  { %v571_v6 = vpack.c.b16 %v559_v58, %v559_v58 }
 0x289   :  { %754 = vperm.xlu1 %1457, %v1913_v57  }
 0x28a   :  { %v572_v42 = vpack.c.b8 %v571_v6, %v571_v6 }
 0x28c   :  { %vm2106_vm6 = vnez %v572_v42 }
 0x28d   :  { %1088 = vrot.lane.b32.xlu1 %v1864_v62, %s1658_s16 }
 0x28e   :  { %1460 = vset.pattern.permute.xlu1 %v1660_v0 }
 0x291   :  { %476 = vperm.xlu1 %1460, %v1913_v57   ;;  %v555_v57 = vunpack.c.0.s8 %v2045_v46 }
 0x293   :  { %v563_v1 = vpack.c.b16 %v555_v57, %v555_v57 }
 0x295   :  { %1040 = vrot.lane.b32.xlu1 %v1864_v62, %s1659_s17  ;;  %v564_v39 = vpack.c.b8 %v563_v1, %v563_v1 }
 0x297   :  { %vm2101_vm5 = vnez %v564_v39  ;;  %v2170_v39 = vsel %vm585_vm8, 16843009, %v1660_v0 }
 0x299   :  { %1086 = vrot.lane.b32.xlu1 %v1861_v56, %s1658_s16 }
 0x29d   :  { %1076 = vrot.lane.b32.xlu1 %v1882_v34, %s1661_s18 }
 0x2a1   :  { %1072 = vrot.lane.b32.xlu1 %v1876_v23, %s1661_s18 }
 0x2a5   :  { %1068 = vrot.lane.b32.xlu1 %v1870_v11, %s1661_s18 }
 0x2a9   :  { %1064 = vrot.lane.b32.xlu1 %v1864_v62, %s1661_s18 }
 0x2ad   :  { %1062 = vrot.lane.b32.xlu1 %v1861_v56, %s1661_s18 }
 0x2c2   :  { %v435_v32 = vpop.trf.xlu1 }
 0x2c3   :  { %v2075_v43 = vrot.slane %v435_v32, %v485_v63  ;;  %v654_v44 = vrot.slane %v435_v32, %v653_v7  ;;  %v2077_v45 = vrot.slane %v435_v32, %v763_v10  ;;  %v874_v47 = vrot.slane %v435_v32, %v873_v14 }
 0x2c5   :  { %v657_v55 = vadd.f32 %v654_v44, %v1987_v12  ;;  %v877_v57 = vadd.f32 %v874_v47, %v1985_v9  ;;  %v655_v58 = vadd.f32 %v654_v44, %v1968_v2  ;;  %v875_v59 = vadd.f32 %v874_v47, %v1973_v3 }
 0x2c6   :  { %v659_v63 = vadd.f32 %v654_v44, %v1989_v13  ;;  %v879_v1 = vadd.f32 %v874_v47, %v1995_v19  ;;  %v656_v6 = vadd.f32 %v654_v44, %v1981_v8  ;;  %v876_v7 = vadd.f32 %v874_v47, %v1977_v5 }
 0x2c7   :  { %v667_v10 = vadd.f32 %v2070_v31, %v657_v55  ;;  %v887_v46 = vadd.f32 %v2073_v38, %v877_v57  ;;  %v665_v12 = vadd.f32 %v2070_v31, %v655_v58  ;;  %v885_v9 = vadd.f32 %v2073_v38, %v875_v59 }
 0x2c8   :  { %v669_v2 = vadd.f32 %v2070_v31, %v659_v63  ;;  %v889_v3 = vadd.f32 %v2073_v38, %v879_v1  ;;  %v666_v13 = vadd.f32 %v2070_v31, %v656_v6  ;;  %v578_v19 = vpack.c.b8 %v2081_v50, %v2081_v50 }
 0x2c9   :  { %v1266_v8 = vmul.f32 -1.442695, %v667_v10  ;;  %v1284_v14 = vmul.f32 -1.442695, %v887_v46  ;;  %v1264_v27 = vmul.f32 -1.442695, %v665_v12  ;;  %v881_v28 = vadd.f32 %v874_v47, %v2013_v40  ;;  %v457_v40 = vpop.permute.xlu0 %456 }
 0x2ca   :  { %v1282_v32 = vmul.f32 -1.442695, %v885_v9  ;;  %v886_v57 = vadd.f32 %v2073_v38, %v876_v7  ;;  %v882_v58 = vadd.f32 %v874_v47, %v869_v52  ;;  %v560_v59 = vunpack.c.1.s8 %v2052_v51 }
 0x2cb   :  { %1502 = vpow2.f32 %v1266_v8  ;;  %v1268_v63 = vmul.f32 -1.442695, %v669_v2  ;;  %v1286_v1 = vmul.f32 -1.442695, %v889_v3  ;;  %v891_v6 = vadd.f32 %v2073_v38, %v881_v28 }
 0x2cc   :  { %1504 = vpow2.f32 %v1284_v14  ;;  %v892_v42 = vadd.f32 %v2073_v38, %v882_v58  ;;  %v658_v10 = vadd.f32 %v654_v44, %v1991_v16  ;;  %v878_v7 = vadd.f32 %v874_v47, %v2011_v37 }
 0x2cd   :  { %1506 = vpow2.f32 %v1264_v27  ;;  %v1265_v51 = vmul.f32 -1.442695, %v666_v13  ;;  %v660_v52 = vadd.f32 %v654_v44, %v2005_v26  ;;  %v880_v48 = vadd.f32 %v874_v47, %v2001_v24  ;;  %v461_v14 = vpop.permute.xlu0 %460 }
 0x2ce   :  { %1508 = vpow2.f32 %v1282_v32  ;;  %v1283_v46 = vmul.f32 -1.442695, %v886_v57  ;;  %v668_v12 = vadd.f32 %v2070_v31, %v658_v10  ;;  %v888_v9 = vadd.f32 %v2073_v38, %v878_v7 }
 0x2cf   :  { %1510 = vpow2.f32 %v1268_v63  ;;  %v1288_v2 = vmul.f32 -1.442695, %v891_v6  ;;  %v670_v16 = vadd.f32 %v2070_v31, %v660_v52  ;;  %v661_v37 = vadd.f32 %v654_v44, %v2009_v36 }
 0x2d0   :  { %1512 = vpow2.f32 %v1286_v1  ;;  %v1289_v3 = vmul.f32 -1.442695, %v892_v42  ;;  %v890_v26 = vadd.f32 %v2073_v38, %v880_v48  ;;  %v662_v24 = vadd.f32 %v654_v44, %v2015_v41 }
 0x2d1   :  { %1514 = vpow2.f32 %v1265_v51  ;;  %v569_v47 = vpack.c.b16 %v558_v53, %v558_v53  ;;  %v1267_v13 = vmul.f32 -1.442695, %v668_v12  ;;  %v671_v8 = vadd.f32 %v2070_v31, %v661_v37  ;;  %v465_v1 = vpop.permute.xlu0 %464 }
 0x2d2   :  { %1516 = vpow2.f32 %v1283_v46  ;;  %v1285_v27 = vmul.f32 -1.442695, %v888_v9  ;;  %v672_v28 = vadd.f32 %v2070_v31, %v662_v24  ;;  %v2135_v36 = vadd.f32 %v2075_v43, %v453_v60 }
 0x2d3   :  { %1518 = vpow2.f32 %v1288_v2  ;;  %v573_v32 = vpack.c.b16 %v560_v59, %v560_v59  ;;  %v1269_v57 = vmul.f32 -1.442695, %v670_v16  ;;  %v2138_v38 = vadd.f32 %v2075_v43, %v457_v40 }
 0x2d4   :  { %v587_v41 = vsel %vm2101_vm5, 16843009, %v1660_v0  ;;  %1520 = vpow2.f32 %v1289_v3  ;;  %v1287_v44 = vmul.f32 -1.442695, %v890_v26  ;;  %v2144_v53 = vstv %s2120_s1 }
 0x2d5   :  { %v2149_v31 = vsel %vm2106_vm6, 16843009, %v1660_v0  ;;  %1522 = vpow2.f32 %v1267_v13  ;;  %v1270_v60 = vmul.f32 -1.442695, %v671_v8  ;;  %v2157_v5 = vsel %vm2112_vm7, 16843009, %v1660_v0 }
 0x2d6   :  { %v570_v58 = vpack.c.b8 %v569_v47, %v569_v47  ;;  %1524 = vpow2.f32 %v1285_v27  ;;  %v1271_v59 = vmul.f32 -1.442695, %v672_v28  ;;  %vm2162_vm9 = vnez %v578_v19  ;;  %v469_v27 = vpop.permute.xlu0 %468 }
 0x2d7   :  { %v574_v63 = vpack.c.b8 %v573_v32, %v573_v32  ;;  %1526 = vpow2.f32 %v1269_v57  ;;  %v595_v6 = vunpack.c.0.s8 %v587_v41  ;;  %v2173_v40 = vadd.f32 %v2075_v43, %v461_v14 }
 0x2d8   :  { %v1503_v49 = vpop.eup %1502  ;;  %1528 = vpow2.f32 %v1287_v44  ;;  %v599_v19 = vunpack.c.0.s8 %v2149_v31  ;;  %v596_v10 = vunpack.c.0.s8 %v2157_v5  ;;  %v2180_v52 = vsel %vm2162_vm9, 16843009, %v1660_v0 }
 0x2d9   :  { %v1505_v42 = vpop.eup %1504  ;;  %v699_v50 = vadd.f32 1.0, %v1503_v49  ;;  %1530 = vpow2.f32 %v1270_v60  ;;  %vm2182_vm10 = vnez %v570_v58  ;;  %v601_v9 = vunpack.c.0.s8 %v2170_v39 }
 0x2da   :  { %v1507_v7 = vpop.eup %1506  ;;  %v919_v51 = vadd.f32 1.0, %v1505_v42  ;;  %1532 = vpow2.f32 %v1271_v59  ;;  %vm2187_vm11 = vnez %v574_v63  ;;  %v765_v3 = vadd.f32 %v2077_v45, %v1993_v18 }
 0x2db   :  { %v1509_v46 = vpop.eup %1508  ;;  %1534 = vrcp.f32 %v699_v50  ;;  %v697_v12 = vadd.f32 1.0, %v1507_v7  ;;  %v2194_v26 = vadd.f32 %v2075_v43, %v465_v1  ;;  %v602_v13 = vunpack.c.0.s8 %v2180_v52 }
 0x2dc   :  { %v1511_v16 = vpop.eup %1510  ;;  %1536 = vrcp.f32 %v919_v51  ;;  %v917_v37 = vadd.f32 1.0, %v1509_v46  ;;  %v2200_v8 = vsel %vm2182_vm10, 16843009, %v1660_v0  ;;  %v2211_v32 = vsel %vm2187_vm11, 16843009, %v1660_v0  ;;  %v481_v46 = vpop.permute.xlu0 %480 }
 0x2dd   :  { %v1513_v24 = vpop.eup %1512  ;;  %1538 = vrcp.f32 %v697_v12  ;;  %v701_v47 = vadd.f32 1.0, %v1511_v16  ;;  %v766_v57 = vadd.f32 %v2077_v45, %v1997_v20  ;;  %v2216_v31 = vadd.f32 %v2075_v43, %v469_v27 }
 0x2de   :  { %v1515_v14 = vpop.eup %1514  ;;  %1540 = vrcp.f32 %v917_v37  ;;  %v921_v18 = vadd.f32 1.0, %v1513_v24  ;;  %v2220_v15 = vadd.f32 %v2077_v45, %v2060_v61  ;;  %vm2222_vm13 = vcmp.ne.s32.totalorder %v595_v6, 0 }
 0x2df   :  { %v1517_v41 = vpop.eup %1516  ;;  %1542 = vrcp.f32 %v701_v47  ;;  %v698_v44 = vadd.f32 1.0, %v1515_v14  ;;  %v598_v5 = vunpack.c.0.s8 %v2200_v8  ;;  %v775_v20 = vadd.f32 %v2167_v30, %v765_v3 }
 0x2e0   :  { %v1519_v33 = vpop.eup %1518  ;;  %1544 = vrcp.f32 %v921_v18  ;;  %v918_v0 = vadd.f32 1.0, %v1517_v41  ;;  %v497_v55 = vadd.f32 %v2144_v53, %v2135_v36  ;;  %v767_v61 = vadd.f32 %v2077_v45, %v1999_v22 }
 0x2e1   :  { %v1521_v58 = vpop.eup %1520  ;;  %1546 = vrcp.f32 %v698_v44  ;;  %v923_v59 = vadd.f32 1.0, %v1519_v33  ;;  %vm2232_vm14 = vcmp.ne.s32.totalorder %v599_v19, 0  ;;  %v600_v6 = vunpack.c.0.s8 %v2211_v32 }
 0x2e2   :  { %v1523_v63 = vpop.eup %1522  ;;  %1548 = vrcp.f32 %v918_v0  ;;  %v924_v1 = vadd.f32 1.0, %v1521_v58  ;;  %v772_v39 = vadd.f32 %v2077_v45, %v2065_v21  ;;  %v776_v36 = vadd.f32 %v2167_v30, %v766_v57 }
 0x2e3   :  { %v1525_v42 = vpop.eup %1524  ;;  %1550 = vrcp.f32 %v923_v59  ;;  %v700_v50 = vadd.f32 1.0, %v1523_v63  ;;  %v498_v22 = vadd.f32 %v2144_v53, %v2138_v38  ;;  %vm2242_vm15 = vcmp.ne.s32.totalorder %v596_v10, 0 }
 0x2e4   :  { %v1527_v7 = vpop.eup %1526  ;;  %1552 = vrcp.f32 %v924_v1  ;;  %v920_v51 = vadd.f32 1.0, %v1525_v42  ;;  %v1273_v52 = vmul.f32 -1.442695, %v775_v20  ;;  %v768_v48 = vadd.f32 %v2077_v45, %v2003_v25 }
 0x2e5   :  { %v1529_v21 = vpop.eup %1528  ;;  %1554 = vrcp.f32 %v700_v50  ;;  %v702_v12 = vadd.f32 1.0, %v1527_v7  ;;  %v1255_v2 = vmul.f32 -1.442695, %v497_v55  ;;  %v777_v16 = vadd.f32 %v2167_v30, %v767_v61 }
 0x2e6   :  { %v1531_v37 = vpop.eup %1530  ;;  %vm2249_vm0 = vcmp.ne.s32.totalorder %v601_v9, 0  ;;  %1556 = vrcp.f32 %v920_v51  ;;  %v922_v10 = vadd.f32 1.0, %v1529_v21  ;;  %v782_v3 = vadd.f32 %v2167_v30, %v772_v39 }
 0x2e7   :  { %v494_v24 = vadd.f32 %v2075_v43, %v481_v46  ;;  %v1533_v47 = vpop.eup %1532  ;;  %vm2255_vm1 = vcmp.ne.s32.totalorder %v602_v13, 0  ;;  %1558 = vrcp.f32 %v702_v12  ;;  %v703_v14 = vadd.f32 1.0, %v1531_v37 }
 0x2e8   :  { %v1274_v27 = vmul.f32 -1.442695, %v776_v36  ;;  %v499_v9 = vadd.f32 %v2144_v53, %v2173_v40  ;;  %v1535_v18 = vpop.eup %1534  ;;  %1560 = vrcp.f32 %v922_v10  ;;  %v704_v57 = vadd.f32 1.0, %v1533_v47 }
 0x2e9   :  { %v1256_v41 = vmul.f32 -1.442695, %v498_v22  ;;  %v778_v44 = vadd.f32 %v2167_v30, %v768_v48  ;;  %v1537_v33 = vpop.eup %1536  ;;  %v723_v0 = vsel %vm2204_vm12, %v1535_v18, 0.0  ;;  %1562 = vrcp.f32 %v703_v14 }
 0x2ea   :  { %v1275_v13 = vmul.f32 -1.442695, %v777_v16  ;;  %v769_v20 = vadd.f32 %v2077_v45, %v2007_v35  ;;  %v1539_v58 = vpop.eup %1538  ;;  %v943_v59 = vsel %vm2204_vm12, %v1537_v33, 0.0  ;;  %1564 = vrcp.f32 %v704_v57 }
 0x2eb   :  { %v1280_v40 = vmul.f32 -1.442695, %v782_v3  ;;  %v504_v55 = vadd.f32 %v2144_v53, %v494_v24  ;;  %v1541_v61 = vpop.eup %1540  ;;  %v1471_v63 = vpack.i.bf16 %v723_v0, %v943_v59  ;;  %v721_v1 = vsel %vm2222_vm13, %v1539_v58, 0.0 }
 0x2ec   :  { %1566 = vpow2.f32 %v1273_v52  ;;  %v1257_v39 = vmul.f32 -1.442695, %v499_v9  ;;  %v1543_v42 = vpop.eup %1542  ;;  %v941_v50 = vsel %vm2222_vm13, %v1541_v61, 0.0  ;;  %v1276_v35 = vmul.f32 -1.442695, %v778_v44 }
 0x2ed   :  { %1568 = vpow2.f32 %v1255_v2  ;;  %v500_v36 = vadd.f32 %v2144_v53, %v2194_v26  ;;  %v1545_v22 = vpop.eup %1544  ;;  %1472 = vrot.lane.b32.xlu1 %v1471_v63, %s1661_s18  ;;  %v1461_v7 = vpack.i.bf16 %v721_v1, %v941_v50  ;;  %v725_v51 = vsel %vm2232_vm14, %v1543_v42, 0.0 }
 0x2ee   :  { %1570 = vpow2.f32 %v1274_v27  ;;  %v779_v52 = vadd.f32 %v2167_v30, %v769_v20  ;;  %v1547_v48 = vpop.eup %1546  ;;  %v945_v21 = vsel %vm2232_vm14, %v1545_v22, 0.0  ;;  %v1262_v46 = vmul.f32 -1.442695, %v504_v55 }
 0x2ef   :  { %1572 = vpow2.f32 %v1256_v41  ;;  %v501_v12 = vadd.f32 %v2144_v53, %v2216_v31  ;;  %v1549_v26 = vpop.eup %1548  ;;  %1462 = vrot.lane.b32.xlu0 %v1461_v7, %s1661_s18  ;;  %v1481_v2 = vpack.i.bf16 %v725_v51, %v945_v21  ;;  %v722_v16 = vsel %vm2242_vm15, %v1547_v48, 0.0 }
 0x2f0   :  { %1574 = vpow2.f32 %v1275_v13  ;;  %v780_v37 = vadd.f32 %v2167_v30, %v2220_v15  ;;  %v1551_v10 = vpop.eup %1550  ;;  %v942_v3 = vsel %vm2242_vm15, %v1549_v26, 0.0  ;;  %vm2292_vm2 = vcmp.ne.s32.totalorder %v598_v5, 0 }
 0x2f1   :  { %1576 = vpow2.f32 %v1280_v40  ;;  %v1258_v31 = vmul.f32 -1.442695, %v500_v36  ;;  %v1553_v47 = vpop.eup %1552  ;;  %1482 = vrot.lane.b32.xlu1 %v1481_v2, %s1661_s18  ;;  %v1466_v14 = vpack.i.bf16 %v722_v16, %v942_v3  ;;  %v947_v27 = vsel %vm2249_vm0, %v1551_v10, 0.0 }
 0x2f2   :  { %1578 = vpow2.f32 %v1257_v39  ;;  %v1277_v15 = vmul.f32 -1.442695, %v779_v52  ;;  %v1555_v9 = vpop.eup %1554  ;;  %v948_v18 = vsel %vm2255_vm1, %v1553_v47, 0.0  ;;  %vm2303_vm3 = vcmp.ne.s32.totalorder %v600_v6, 0 }
 0x2f3   :  { %1580 = vpow2.f32 %v1276_v35  ;;  %v1259_v5 = vmul.f32 -1.442695, %v501_v12  ;;  %v1557_v57 = vpop.eup %1556  ;;  %1467 = vrot.lane.b32.xlu0 %v1466_v14, %s1661_s18  ;;  %v1491_v41 = vpack.i.bf16 %v948_v18, %v947_v27  ;;  %v724_v44 = vsel %vm2292_vm2, %v1555_v9, 0.0 }
 0x2f4   :  { %1582 = vpow2.f32 %v1262_v46  ;;  %v1278_v33 = vmul.f32 -1.442695, %v780_v37  ;;  %v1559_v0 = vpop.eup %1558  ;;  %v944_v13 = vsel %vm2292_vm2, %v1557_v57, 0.0  ;;  %vm1231_vm5 = vcmask 261120  }
 0x2f5   :  { %1584 = vpow2.f32 %v1258_v31  ;;  %v1561_v32 = vpop.eup %1560  ;;  %1492 = vrot.lane.b32.xlu1 %v1491_v41, %s1661_s18  ;;  %v1476_v6 = vpack.i.bf16 %v724_v44, %v944_v13  ;;  %v726_v58 = vsel %vm2303_vm3, %v1559_v0, 0.0 }
 0x2f6   :  { %1586 = vpow2.f32 %v1277_v15  ;;  %v1563_v20 = vpop.eup %1562  ;;  %v946_v59 = vsel %vm2303_vm3, %v1561_v32, 0.0 }
 0x2f7   :  { %1588 = vpow2.f32 %v1259_v5  ;;  %v1565_v40 = vpop.eup %1564  ;;  %1477 = vrot.lane.b32.xlu0 %v1476_v6, %s1661_s18  ;;  %v1486_v63 = vpack.i.bf16 %v726_v58, %v946_v59  ;;  %v727_v42 = vsel %vm2249_vm0, %v1563_v20, 0.0 }
 0x2f8   :  { %1590 = vpow2.f32 %v1278_v33  ;;  %v728_v50 = vsel %vm2255_vm1, %v1565_v40, 0.0 }
 0x2f9   :  { %v1567_v55 = vpop.eup %1566  ;;  %v1496_v21 = vpack.i.bf16 %v728_v50, %v727_v42 }
 0x2fa   :  { %v1569_v61 = vpop.eup %1568  ;;  %v807_v1 = vadd.f32 1.0, %v1567_v55 }
 0x2fb   :  { %v1571_v39 = vpop.eup %1570  ;;  %v529_v35 = vadd.f32 1.0, %v1569_v61  ;;  %1487 = vrot.lane.b32.xlu0 %v1486_v63, %s1661_s18 }
 0x2fc   :  { %v1573_v36 = vpop.eup %1572  ;;  %1592 = vrcp.f32 %v807_v1  ;;  %v808_v22 = vadd.f32 1.0, %v1571_v39  ;;  %v473_v51 = vpop.permute.xlu1 %472 }
 0x2fd   :  { %v1575_v7 = vpop.eup %1574  ;;  %1594 = vrcp.f32 %v529_v35  ;;  %v530_v52 = vadd.f32 1.0, %v1573_v36  ;;  %v492_v46 = vadd.f32 %v2075_v43, %v473_v51  ;;  %v1039_v51 = vpop.permute.xlu0 %1038 }
 0x2fe   :  { %v1577_v48 = vpop.eup %1576  ;;  %1596 = vrcp.f32 %v808_v22  ;;  %v809_v12 = vadd.f32 1.0, %v1575_v7 }
 0x2ff   :  { %v1579_v26 = vpop.eup %1578  ;;  %1598 = vrcp.f32 %v530_v52  ;;  %v814_v2 = vadd.f32 1.0, %v1577_v48  ;;  %1497 = vrot.lane.b32.xlu0 %v1496_v21, %s1661_s18  ;;  %v502_v37 = vadd.f32 %v2144_v53, %v492_v46 }
 0x300   :  { %v1581_v16 = vpop.eup %1580  ;;  %1600 = vrcp.f32 %v809_v12  ;;  %v531_v10 = vadd.f32 1.0, %v1579_v26  ;;  %v1091_v31 = vpop.permute.xlu1 %1090 }
 0x301   :  { %v1583_v3 = vpop.eup %1582  ;;  %1602 = vrcp.f32 %v814_v2  ;;  %v810_v47 = vadd.f32 1.0, %v1581_v16  ;;  %v1260_v27 = vmul.f32 -1.442695, %v502_v37  ;;  %1356 = vmatprep.subr.mxu0 %v1091_v31  ;;  %1407 = vmatprep.subr.mxu1 %v1091_v31 }
 0x302   :  { %v1585_v14 = vpop.eup %1584  ;;  %1604 = vrcp.f32 %v531_v10  ;;  %v536_v15 = vadd.f32 1.0, %v1583_v3  ;;  %1357 = vmatpush3.msra.mxu0 %v2054_v54  ;;  %1423 = vmatpush3.msra.mxu1 %v2054_v54 }
 0x303   :  { %v1587_v9 = vpop.eup %1586  ;;  %1606 = vrcp.f32 %v810_v47  ;;  %v532_v18 = vadd.f32 1.0, %v1585_v14  ;;  %v1075_v47 = vpop.permute.xlu0 %1074 }
 0x304   :  { %v1589_v5 = vpop.eup %1588  ;;  %1608 = vpow2.f32 %v1260_v27  ;;  %v811_v57 = vadd.f32 1.0, %v1587_v9  ;;  %v755_v44 = vpop.permute.xlu1 %754 }
 0x305   :  { %v1591_v41 = vpop.eup %1590  ;;  %1610 = vrcp.f32 %v536_v15  ;;  %v533_v33 = vadd.f32 1.0, %v1589_v5  ;;  %v2329_v0 = vadd.f32 %v2077_v45, %v755_v44 }
 0x306   :  { %1612 = vrcp.f32 %v532_v18  ;;  %v812_v13 = vadd.f32 1.0, %v1591_v41 }
 0x307   :  { %1614 = vrcp.f32 %v811_v57  ;;  %v1071_v15 = vpop.permute.xlu0 %1070 }
 0x308   :  { %1616 = vrcp.f32 %v533_v33  ;;  %v1089_v6 = vpop.permute.xlu1 %1088 }
 0x309   :  { %v2331_v32 = vpop.eup %1592  ;;  %1618 = vrcp.f32 %v812_v13  ;;  %1358 = vmatprep.subr.mxu0 %v1089_v6  ;;  %1408 = vmatprep.subr.mxu1 %v1089_v6 }
 0x30a   :  { %v2333_v54 = vpop.eup %1594  ;;  %v831_v20 = vsel %vm2222_vm13, %v2331_v32, 0.0 }
 0x30b   :  { %v2338_v58 = vpop.eup %1596  ;;  %v611_v45 = vsel %vm2222_vm13, %v2333_v54, 0.0  ;;  %v1067_v5 = vpop.permute.xlu0 %1066 }
 0x30c   :  { %v2343_v59 = vpop.eup %1598  ;;  %v832_v40 = vsel %vm2242_vm15, %v2338_v58, 0.0  ;;  %v477_v61 = vpop.permute.xlu1 %476 }
 0x30d   :  { %v2348_v55 = vpop.eup %1600  ;;  %v612_v63 = vsel %vm2242_vm15, %v2343_v59, 0.0  ;;  %v2356_v39 = vadd.f32 %v2075_v43, %v477_v61 }
 0x30e   :  { %v2353_v1 = vpop.eup %1602  ;;  %v833_v42 = vsel %vm2204_vm12, %v2348_v55, 0.0 }
 0x30f   :  { %v2361_v50 = vpop.eup %1604  ;;  %v838_v35 = vsel %vm2255_vm1, %v2353_v1, 0.0 }
 0x310   :  { %v2366_v36 = vpop.eup %1606  ;;  %v613_v22 = vsel %vm2204_vm12, %v2361_v50, 0.0  ;;  %v1041_v43 = vpop.permute.xlu1 %1040 }
 0x311   :  { %v1609_v7 = vpop.eup %1608  ;;  %v834_v52 = vsel %vm2292_vm2, %v2366_v36, 0.0  ;;  %1359 = vmatpush3.msra.mxu0 %v1041_v43  ;;  %1424 = vmatpush3.msra.mxu1 %v1041_v43 }
 0x312   :  { %v2374_v48 = vpop.eup %1610  ;;  %v534_v21 = vadd.f32 1.0, %v1609_v7 }
 0x313   :  { %v2376_v46 = vpop.eup %1612  ;;  %v618_v12 = vsel %vm2255_vm1, %v2374_v48, 0.0 }
 0x314   :  { %v2381_v26 = vpop.eup %1614  ;;  %1620 = vrcp.f32 %v534_v21  ;;  %v614_v2 = vsel %vm2292_vm2, %v2376_v46, 0.0  ;;  %v1087_v37 = vpop.permute.xlu1 %1086 }
 0x315   :  { %v2386_v16 = vpop.eup %1616  ;;  %v835_v10 = vsel %vm2232_vm14, %v2381_v26, 0.0  ;;  %1360 = vmatprep.subr.mxu0 %v1087_v37  ;;  %1409 = vmatprep.subr.mxu1 %v1087_v37 }
 0x316   :  { %v2391_v3 = vpop.eup %1618  ;;  %v615_v31 = vsel %vm2232_vm14, %v2386_v16, 0.0  ;;  %1361 = vmatpush3.msra.mxu0 %v1039_v51  ;;  %1425 = vmatpush3.msra.mxu1 %v1039_v51 }
 0x317   :  { %v836_v14 = vsel %vm2303_vm3, %v2391_v3, 0.0 }
 0x318   :  { %v1077_v27 = vpop.permute.xlu1 %1076 }
 0x319   :  { %1362 = vmatprep.subr.mxu0 %v1077_v27  ;;  %1410 = vmatprep.subr.mxu1 %v1077_v27 }
 0x31a   :  { %1363 = vmatpush3.msra.mxu0 %v1882_v34  ;;  %1426 = vmatpush3.msra.mxu1 %v1882_v34 }
 0x31b   :  { %1364 = vmatprep.subr.mxu0 %v1075_v47  ;;  %1411 = vmatprep.subr.mxu1 %v1075_v47 }
 0x31c   :  { %1365 = vmatpush3.msra.mxu0 %v1879_v29  ;;  %1427 = vmatpush3.msra.mxu1 %v1879_v29  ;;  %v1073_v9 = vpop.permute.xlu1 %1072 }
 0x31d   :  { %1366 = vmatprep.subr.mxu0 %v1073_v9  ;;  %1412 = vmatprep.subr.mxu1 %v1073_v9 }
 0x31e   :  { %1367 = vmatpush3.msra.mxu0 %v1876_v23  ;;  %1428 = vmatpush3.msra.mxu1 %v1876_v23 }
 0x31f   :  { %1368 = vmatprep.subr.mxu0 %v1071_v15  ;;  %1413 = vmatprep.subr.mxu1 %v1071_v15 }
 0x320   :  { %1369 = vmatpush3.msra.mxu0 %v1873_v17  ;;  %1429 = vmatpush3.msra.mxu1 %v1873_v17  ;;  %v1069_v34 = vpop.permute.xlu1 %1068 }
 0x321   :  { %v2405_v18 = vpop.eup %1620  ;;  %1370 = vmatprep.subr.mxu0 %v1069_v34  ;;  %1414 = vmatprep.subr.mxu1 %v1069_v34  ;;  %v1630_v34 = vld [vmem:[%s2556_s0] sm:$0xff] }
 0x322   :  { %v616_v29 = vsel %vm2303_vm3, %v2405_v18, 0.0  ;;  %1371 = vmatpush3.msra.mxu0 %v1870_v11  ;;  %1430 = vmatpush3.msra.mxu1 %v1870_v11  ;;  %v781_v11 = vadd.f32 %v2167_v30, %v2329_v0 }
 0x323   :  { %1372 = vmatprep.subr.mxu0 %v1067_v5  ;;  %1415 = vmatprep.subr.mxu1 %v1067_v5 }
 0x324   :  { %1373 = vmatpush3.msra.mxu0 %v1867_v4  ;;  %1431 = vmatpush3.msra.mxu1 %v1867_v4  ;;  %v1065_v23 = vpop.permute.xlu1 %1064  ;;  %v503_v4 = vadd.f32 %v2144_v53, %v2356_v39  ;;  %v1279_v57 = vmul.f32 -1.442695, %v781_v11  ;;  %v1631_v11 = vld [vmem:[%s2556_s0 + $0x8] sm:$0xff] }
 0x325   :  { %1374 = vmatprep.subr.mxu0 %v1065_v23  ;;  %1416 = vmatprep.subr.mxu1 %v1065_v23 }
 0x326   :  { %1375 = vmatpush3.msra.mxu0 %v1864_v62  ;;  %1432 = vmatpush3.msra.mxu1 %v1864_v62  ;;  %v1261_v41 = vmul.f32 -1.442695, %v503_v4  ;;  %1622 = vpow2.f32 %v1279_v57 }
 0x328   :  { %v1063_v17 = vpop.permute.xlu1 %1062  ;;  %1624 = vpow2.f32 %v1261_v41 }
 0x329   :  { %1376 = vmatprep.subr.mxu0 %v1063_v17  ;;  %1417 = vmatprep.subr.mxu1 %v1063_v17 }
 0x32a   :  { %1377 = vmatpush3.msra.mxu0 %v1861_v56  ;;  %1433 = vmatpush3.msra.mxu1 %v1861_v56 }
 0x333   :  { %v1623_v62 = vpop.eup %1622 }
 0x334   :  { %v813_v0 = vadd.f32 1.0, %v1623_v62  ;;  %v1632_v62 = vld [vmem:[%s2556_s0 + $0x10] sm:$0xff] }
 0x335   :  { %v1625_v30 = vpop.eup %1624 }
 0x336   :  { %v535_v37 = vadd.f32 1.0, %v1625_v30  ;;  %1626 = vrcp.f32 %v813_v0 }
 0x338   :  { %1628 = vrcp.f32 %v535_v37 }
 0x343   :  { %v1627_v46 = vpop.eup %1626 }
 0x344   :  { %v837_v26 = vsel %vm2249_vm0, %v1627_v46, 0.0 }
 0x345   :  { %v1629_v48 = vpop.eup %1628 }
 0x35f   :  { %v1473_v44 = vpop.permute.xlu1 %1472 }
 0x360   :  { %v1474_v7 = vunpack.i.l.bf16 %v1473_v44 }
 0x361   :  { %v1463_v33 = vpop.permute.xlu0 %1462 }
 0x362   :  { %v1465_v13 = vunpack.i.h.bf16 %v1463_v33  ;;  %v1464_v6 = vunpack.i.l.bf16 %v1463_v33  ;;  %v1024_v58 = vsel %vm1013_vm4, %v833_v42, %v1474_v7  ;;  %v1633_v7 = vld [vmem:[%s2556_s0 + $0x18] sm:$0xff] }
 0x363   :  { %v1483_v61 = vpop.permute.xlu1 %1482 }
 0x364   :  { %v1022_v56 = vsel %vm1013_vm4, %v831_v20, %v1464_v6  ;;  %v1014_v53 = vsel %vm1013_vm4, %v611_v45, %v1465_v13  ;;  %v1475_v20 = vunpack.i.h.bf16 %v1473_v44  ;;  %v1484_v55 = vunpack.i.l.bf16 %v1483_v61 }
 0x365   :  { %v1468_v39 = vpop.permute.xlu0 %1467  ;;  %1174 = vmatprep.mubr.f32.mxu0 %v1022_v56  ;;  %v1485_v42 = vunpack.i.h.bf16 %v1483_v61 }
 0x366   :  { %v1470_v51 = vunpack.i.h.bf16 %v1468_v39  ;;  %v1469_v43 = vunpack.i.l.bf16 %v1468_v39  ;;  %1175 = vmatmul.mubr.f32.vlgmr.msra.gmra.mxu0 %v1014_v53  ;;  %v1026_v36 = vsel %vm1013_vm4, %v835_v10, %v1484_v55  ;;  %v617_v10 = vsel %vm2249_vm0, %v1629_v48, 0.0 }
 0x367   :  { %v1493_v21 = vpop.permute.xlu1 %1492 }
 0x368   :  { %v1023_v60 = vsel %vm1013_vm4, %v832_v40, %v1469_v43  ;;  %v1495_v32 = vunpack.i.h.bf16 %v1493_v21  ;;  %v1015_v54 = vsel %vm1013_vm4, %v612_v63, %v1470_v51  ;;  %v1016_v63 = vsel %vm1013_vm4, %v613_v22, %v1475_v20 }
 0x369   :  { %v1478_v45 = vpop.permute.xlu0 %1477  ;;  %1179 = vmatprep.mubr.f32.mxu0 %v1023_v60 }
 0x36a   :  { %v1479_v47 = vunpack.i.l.bf16 %v1478_v45  ;;  %1180 = vmatmul.mubr.f32.gmra.mxu0 %v1015_v54  ;;  %v1029_v19 = vsel %vm1013_vm4, %v838_v35, %v1495_v32  ;;  %v1480_v59 = vunpack.i.h.bf16 %v1478_v45  ;;  %v1634_v32 = vld [vmem:[%s2556_s0 + $0x38] sm:$0xff]  ;;  %v1635_v45 = vld [vmem:[%s2556_s0 + $0x20] sm:$0xff] }
 0x36b   :  { %1184 = vmatprep.mubr.f32.mxu0 %v1024_v58  ;;  %1209 = vmatprep.mubr.f32.mxu1 %v1029_v19 }
 0x36c   :  { %v1025_v1 = vsel %vm1013_vm4, %v834_v52, %v1479_v47  ;;  %v1017_v28 = vsel %vm1013_vm4, %v614_v2, %v1480_v59  ;;  %v1018_v52 = vsel %vm1013_vm4, %v615_v31, %v1485_v42  ;;  %v1494_v2 = vunpack.i.l.bf16 %v1493_v21 }
 0x36d   :  { %v1488_v40 = vpop.permute.xlu0 %1487 }
 0x36e   :  { %1185 = vmatmul.mubr.f32.gmra.mxu0 %v1016_v63  ;;  %v1489_v50 = vunpack.i.l.bf16 %v1488_v40  ;;  %v1490_v22 = vunpack.i.h.bf16 %v1488_v40  ;;  %v1028_v16 = vsel %vm1013_vm4, %v837_v26, %v1494_v2  ;;  %v1636_v63 = vld [vmem:[%s2556_s0 + $0x28] sm:$0xff] }
 0x36f   :  { %1189 = vmatprep.mubr.f32.mxu0 %v1025_v1 }
 0x370   :  { %v1027_v25 = vsel %vm1013_vm4, %v836_v14, %v1489_v50  ;;  %v1019_v49 = vsel %vm1013_vm4, %v616_v29, %v1490_v22 }
 0x371   :  { %v1498_v35 = vpop.permute.xlu0 %1497 }
 0x372   :  { %v1500_v27 = vunpack.i.h.bf16 %v1498_v35  ;;  %1190 = vmatmul.mubr.f32.gmra.mxu0 %v1017_v28 }
 0x373   :  { %1194 = vmatprep.mubr.f32.mxu0 %v1026_v36 }
 0x374   :  { %v1021_v24 = vsel %vm1013_vm4, %v618_v12, %v1500_v27  ;;  %v1499_v12 = vunpack.i.l.bf16 %v1498_v35  ;;  %v1637_v35 = vld [vmem:[%s2556_s0 + $0x30] sm:$0xff] }
 0x375   :  { %1210 = vmatmul.mubr.f32.vlgmr.msra.gmra.mxu1 %v1021_v24 }
 0x376   :  { %1195 = vmatmul.mubr.f32.gmra.mxu0 %v1018_v52  ;;  %v1020_v3 = vsel %vm1013_vm4, %v617_v10, %v1499_v12 }
 0x377   :  { %1199 = vmatprep.mubr.f32.mxu0 %v1027_v25 }
 0x37a   :  { %1200 = vmatmul.mubr.f32.gmra.mxu0 %v1019_v49 }
 0x37b   :  { %1204 = vmatprep.mubr.f32.mxu0 %v1028_v16 }
 0x37e   :  { %1205 = vmatmul.mubr.f32.gmra.mxu0 %v1020_v3 }
 0x426   :  { %v1378_v31 = vpop.f32.mrf.mxu0 }
 0x428   :  { %v1379_v14 = vpop.f32.mrf.mxu0 }
 0x429   :  { %v1380_v8 = vadd.f32 %v1379_v14, %v1378_v31 }
 0x42a   :  { %v1381_v15 = vpop.f32.mrf.mxu0 }
 0x42b   :  { %v1215_v9 = vmul.f32 0.25, %v1380_v8 }
 0x42c   :  { %v1382_v18 = vpop.f32.mrf.mxu0 }
 0x42d   :  { %v1223_v29 = vadd.f32 %v1630_v34, %v1215_v9  ;;  %v1383_v5 = vadd.f32 %v1382_v18, %v1381_v15 }
 0x42e   :  { %v1384_v23 = vpop.f32.mrf.mxu0 }
 0x42f   :  { %1232 = vst.msk [vmem:[%s2561_s5] sm:$0xff] %vm1231_vm5, %v1223_v29  ;;  %v1216_v38 = vmul.f32 0.25, %v1383_v5 }
 0x430   :  { %v1385_v17 = vpop.f32.mrf.mxu0 }
 0x431   :  { %v1224_v4 = vadd.f32 %v1631_v11, %v1216_v38  ;;  %v1386_v57 = vadd.f32 %v1385_v17, %v1384_v23 }
 0x432   :  { %v1387_v41 = vpop.f32.mrf.mxu0 }
 0x433   :  { %1233 = vst.msk [vmem:[%s2561_s5 + $0x8] sm:$0xff] %vm1231_vm5, %v1224_v4  ;;  %v1217_v44 = vmul.f32 0.25, %v1386_v57 }
 0x434   :  { %v1388_v33 = vpop.f32.mrf.mxu0 }
 0x435   :  { %v1225_v13 = vadd.f32 %v1632_v62, %v1217_v44  ;;  %v1389_v6 = vadd.f32 %v1388_v33, %v1387_v41  ;;  %v1399_v61 = vpop.f32.mrf.mxu1 }
 0x436   :  { %v1390_v56 = vpop.f32.mrf.mxu0 }
 0x437   :  { %1234 = vst.msk [vmem:[%s2561_s5 + $0x10] sm:$0xff] %vm1231_vm5, %v1225_v13  ;;  %v1218_v53 = vmul.f32 0.25, %v1389_v6  ;;  %v1400_v30 = vpop.f32.mrf.mxu1 }
 0x438   :  { %v1401_v0 = vadd.f32 %v1400_v30, %v1399_v61  ;;  %v1391_v39 = vpop.f32.mrf.mxu0 }
 0x439   :  { %v1226_v51 = vadd.f32 %v1633_v7, %v1218_v53  ;;  %v1392_v43 = vadd.f32 %v1391_v39, %v1390_v56 }
 0x43a   :  { %v1222_v21 = vmul.f32 0.25, %v1401_v0  ;;  %v1393_v37 = vpop.f32.mrf.mxu0 }
 0x43b   :  { %1235 = vst.msk [vmem:[%s2561_s5 + $0x18] sm:$0xff] %vm1231_vm5, %v1226_v51  ;;  %v1219_v60 = vmul.f32 0.25, %v1392_v43 }
 0x43c   :  { %v1230_v54 = vadd.f32 %v1634_v32, %v1222_v21  ;;  %v1394_v20 = vpop.f32.mrf.mxu0 }
 0x43d   :  { %v1227_v47 = vadd.f32 %v1635_v45, %v1219_v60  ;;  %v1395_v58 = vadd.f32 %v1394_v20, %v1393_v37 }
 0x43e   :  { %1239 = vst.msk [vmem:[%s2561_s5 + $0x38] sm:$0xff] %vm1231_vm5, %v1230_v54  ;;  %v1396_v19 = vpop.f32.mrf.mxu0 }
 0x43f   :  { %1236 = vst.msk [vmem:[%s2561_s5 + $0x20] sm:$0xff] %vm1231_vm5, %v1227_v47  ;;  %v1220_v59 = vmul.f32 0.25, %v1395_v58 }
 0x440   :  { %v1397_v40 = vpop.f32.mrf.mxu0 }
 0x441   :  { %v1228_v55 = vadd.f32 %v1636_v63, %v1220_v59  ;;  %v1398_v1 = vadd.f32 %v1397_v40, %v1396_v19 }
 0x443   :  { %1237 = vst.msk [vmem:[%s2561_s5 + $0x28] sm:$0xff] %vm1231_vm5, %v1228_v55  ;;  %v1221_v42 = vmul.f32 0.25, %v1398_v1 }
 0x445   :  { %v1229_v28 = vadd.f32 %v1637_v35, %v1221_v42 }
 0x447   :  { %1238 = vst.msk [vmem:[%s2561_s5 + $0x30] sm:$0xff] %vm1231_vm5, %v1229_v28 }
 0x448   :  { %1244 = vsyncpa [#allocation3], 1 }

</bundles_post_ra>
